<compile_context>
chip_gen: v6e
topology: v6e:2x2x1
jax: 0.10.0
libtpu: 0.0.40
codegen_flags: <defaults>
</compile_context>

<pallas_src>
import math

import jax
import jax.numpy as jnp
from jax.experimental import pallas as pl
from jax.experimental.pallas import tpu as pltpu

MU_PAD = 128  # lane-dense width for the mu head output


# ---------------------------------------------------------------------------
# Pallas kernel: fused MLP (fc1 -> relu -> fc2 -> relu -> fc3 -> relu -> mu_fc)
# One grid step processes a (TM, stateDim) tile of the batch; weights resident.
# ---------------------------------------------------------------------------
def policy_mlp_kernel(x_ref,
                      w1_ref, b1_ref,
                      w2_ref, b2_ref,
                      w3_ref, b3_ref,
                      wmu_ref, bmu_ref,
                      mu_ref):
    x = x_ref[...]  # (TM, S) bf16

    h1 = jnp.dot(x, w1_ref[...], preferred_element_type=jnp.float32)
    h1 = jnp.maximum(h1 + b1_ref[...], 0.0).astype(jnp.bfloat16)

    h2 = jnp.dot(h1, w2_ref[...], preferred_element_type=jnp.float32)
    h2 = jnp.maximum(h2 + b2_ref[...], 0.0).astype(jnp.bfloat16)

    h3 = jnp.dot(h2, w3_ref[...], preferred_element_type=jnp.float32)
    h3 = jnp.maximum(h3 + b3_ref[...], 0.0).astype(jnp.bfloat16)

    mu = jnp.dot(h3, wmu_ref[...], preferred_element_type=jnp.float32) + bmu_ref[...]
    mu_ref[...] = mu.astype(mu_ref.dtype)   # (TM, 128) lane-dense store


def policy_mlp(state, params, action_dim, *, tm=128):
    """Run the fused MLP kernel. state: (B, stateDim) -> mu: (B, actionDim) f32."""
    B, S = state.shape
    n_tiles = -(-B // tm)          # ceil
    b_pad = n_tiles * tm

    x = state.astype(jnp.bfloat16)
    if b_pad != B:
        x = jnp.pad(x, ((0, b_pad - B), (0, 0)))

    h1 = params["w1"].shape[1]
    h2 = params["w2"].shape[1]
    h3 = params["w3"].shape[1]

    grid_spec = pltpu.PrefetchScalarGridSpec(
        num_scalar_prefetch=0,
        grid=(n_tiles,),
        in_specs=[
            pl.BlockSpec((tm, S), lambda i: (i, 0)),        # x: batch-tiled
            pl.BlockSpec((S, h1), lambda i: (0, 0)),        # w1: VMEM-resident
            pl.BlockSpec((1, h1), lambda i: (0, 0)),        # b1
            pl.BlockSpec((h1, h2), lambda i: (0, 0)),       # w2
            pl.BlockSpec((1, h2), lambda i: (0, 0)),        # b2
            pl.BlockSpec((h2, h3), lambda i: (0, 0)),       # w3
            pl.BlockSpec((1, h3), lambda i: (0, 0)),        # b3
            pl.BlockSpec((h3, MU_PAD), lambda i: (0, 0)),   # wmu (lane-padded)
            pl.BlockSpec((1, MU_PAD), lambda i: (0, 0)),    # bmu (lane-padded)
        ],
        out_specs=pl.BlockSpec((tm, MU_PAD), lambda i: (i, 0)),
    )

    mu_padded = pl.pallas_call(
        policy_mlp_kernel,
        out_shape=jax.ShapeDtypeStruct((b_pad, MU_PAD), jnp.float32),
        grid_spec=grid_spec,
        compiler_params=pltpu.CompilerParams(
            dimension_semantics=("parallel",)),   # megacore / v7x dual-TC
    )(x,
      params["w1"], params["b1"],
      params["w2"], params["b2"],
      params["w3"], params["b3"],
      params["wmu"], params["bmu"])

    return mu_padded[:B, :action_dim]


# ---------------------------------------------------------------------------
# Full forward pass (kernel + sigma glue), matching PolicyNet.forward semantics.
# ---------------------------------------------------------------------------
def policy_forward(state, episode, action_bounds, params, action_dim):
    mu = policy_mlp(state, params, action_dim)
    # sigma = exp(-episode/500) * actionBounds.max(1)[0]  (row-wise max -> (actionDim,))
    sigma = jnp.exp(-episode / 500.0) * jnp.max(action_bounds, axis=1)
    return mu, sigma


# ---------------------------------------------------------------------------
# Deterministic parameter initialization (xavier_uniform weights, PyTorch-default
# uniform biases), matching the shapes declared in PolicyNet.__init__.
# Weights stored transposed (in, out) in bf16; biases (1, out) in f32.
# The mu head is zero-padded on its output dim to MU_PAD lanes.
# ---------------------------------------------------------------------------
def init_params(key, state_dim, action_dim):
    def xavier(key, fan_in, fan_out):
        limit = math.sqrt(6.0 / (fan_in + fan_out))
        return jax.random.uniform(key, (fan_in, fan_out), jnp.float32, -limit, limit)

    def bias(key, fan_in, fan_out):
        bound = 1.0 / math.sqrt(fan_in)
        return jax.random.uniform(key, (1, fan_out), jnp.float32, -bound, bound)

    keys = jax.random.split(key, 8)
    dims = [(state_dim, 1024), (1024, 256), (256, 64), (64, action_dim)]
    names = ["1", "2", "3", "mu"]
    params = {}
    for i, ((fi, fo), n) in enumerate(zip(dims, names)):
        w = xavier(keys[2 * i], fi, fo)
        b = bias(keys[2 * i + 1], fi, fo)
        if n == "mu":  # lane-pad the head to MU_PAD output columns with zeros
            w = jnp.pad(w, ((0, 0), (0, MU_PAD - fo)))
            b = jnp.pad(b, ((0, 0), (0, MU_PAD - fo)))
        params[f"w{n}"] = w.astype(jnp.bfloat16)
        params[f"b{n}"] = b  # keep biases f32 (epilogue stays on the f32 VPU path)
    # NOTE: sigma_fc exists in __init__ but is unused in forward(); omitted.
    return params


if __name__ == "__main__":
    key = jax.random.PRNGKey(0)
    k_param, k_state, k_lo, k_hi = jax.random.split(key, 4)

    batch = 256          # amortizes the weight DMA over 2 x 128-row tiles
    state_dim = 32
    action_dim = 4

    params = init_params(k_param, state_dim, action_dim)
    state = jax.random.normal(k_state, (batch, state_dim), jnp.float32)
    # actionBounds: (actionDim, 2) = [low, high] per action dimension
    action_bounds = jnp.stack(
        [-jnp.abs(jax.random.normal(k_lo, (action_dim,), jnp.float32)),
         jnp.abs(jax.random.normal(k_hi, (action_dim,), jnp.float32))],
        axis=1,
    )
    episode = jnp.float32(42.0)

    mu, sigma = policy_forward(state, episode, action_bounds, params, action_dim)
    jax.block_until_ready((mu, sigma))

    # Pure-JAX reference mirroring the kernel's bf16-in / f32-accumulate math.
    def ref_mlp(x, p):
        h = x.astype(jnp.bfloat16)
        h = jnp.maximum(jnp.dot(h, p["w1"], preferred_element_type=jnp.float32)
                        + p["b1"], 0.0).astype(jnp.bfloat16)
        h = jnp.maximum(jnp.dot(h, p["w2"], preferred_element_type=jnp.float32)
                        + p["b2"], 0.0).astype(jnp.bfloat16)
        h = jnp.maximum(jnp.dot(h, p["w3"], preferred_element_type=jnp.float32)
                        + p["b3"], 0.0).astype(jnp.bfloat16)
        m = jnp.dot(h, p["wmu"], preferred_element_type=jnp.float32) + p["bmu"]
        return m[:, :action_dim]

    mu_ref = ref_mlp(state, params)
    sigma_ref = jnp.exp(-episode / 500.0) * jnp.max(action_bounds, axis=1)

    assert mu.shape == (batch, action_dim)
    assert sigma.shape == (action_dim,)
    assert jnp.allclose(mu, mu_ref, atol=1e-2, rtol=1e-2)
    assert jnp.allclose(sigma, sigma_ref, atol=1e-6, rtol=1e-6)

    print("KERNEL_OK")
</pallas_src>

<mosaic_0001>
module attributes {stable_mosaic.version = 11 : i64} {
  func.func @policy_mlp_kernel(%arg0: i32, %arg1: memref<128x32xbf16, #tpu.memory_space<vmem>>, %arg2: memref<32x1024xbf16, #tpu.memory_space<vmem>>, %arg3: memref<1x1024xf32, #tpu.memory_space<vmem>>, %arg4: memref<1024x256xbf16, #tpu.memory_space<vmem>>, %arg5: memref<1x256xf32, #tpu.memory_space<vmem>>, %arg6: memref<256x64xbf16, #tpu.memory_space<vmem>>, %arg7: memref<1x64xf32, #tpu.memory_space<vmem>>, %arg8: memref<64x128xbf16, #tpu.memory_space<vmem>>, %arg9: memref<1x128xf32, #tpu.memory_space<vmem>>, %arg10: memref<128x128xf32, #tpu.memory_space<vmem>>) attributes {dimension_semantics = [#tpu.dimension_semantics<parallel>], iteration_bounds = array<i64: 2>, scalar_prefetch = 0 : i64, scratch_operands = 0 : i64, tpu.core_type = #tpu.core_type<tc>, window_params = [{transform_indices = @transform_0, window_bounds = array<i64: 128, 32>}, {pipeline_mode = #tpu.pipeline_mode<synchronous>, transform_indices = @transform_1, window_bounds = array<i64: 32, 1024>}, {pipeline_mode = #tpu.pipeline_mode<synchronous>, transform_indices = @transform_2, window_bounds = array<i64: 1, 1024>}, {pipeline_mode = #tpu.pipeline_mode<synchronous>, transform_indices = @transform_3, window_bounds = array<i64: 1024, 256>}, {pipeline_mode = #tpu.pipeline_mode<synchronous>, transform_indices = @transform_4, window_bounds = array<i64: 1, 256>}, {pipeline_mode = #tpu.pipeline_mode<synchronous>, transform_indices = @transform_5, window_bounds = array<i64: 256, 64>}, {pipeline_mode = #tpu.pipeline_mode<synchronous>, transform_indices = @transform_6, window_bounds = array<i64: 1, 64>}, {pipeline_mode = #tpu.pipeline_mode<synchronous>, transform_indices = @transform_7, window_bounds = array<i64: 64, 128>}, {pipeline_mode = #tpu.pipeline_mode<synchronous>, transform_indices = @transform_8, window_bounds = array<i64: 1, 128>}, {transform_indices = @transform_9, window_bounds = array<i64: 128, 128>}]} {
    %c0 = arith.constant 0 : index
    %c0_0 = arith.constant 0 : index
    %0 = vector.load %arg1[%c0, %c0_0] : memref<128x32xbf16, #tpu.memory_space<vmem>>, vector<128x32xbf16>
    %c0_1 = arith.constant 0 : index
    %c0_2 = arith.constant 0 : index
    %1 = vector.load %arg2[%c0_1, %c0_2] : memref<32x1024xbf16, #tpu.memory_space<vmem>>, vector<32x1024xbf16>
    %cst = arith.constant dense<0.000000e+00> : vector<128x1024xf32>
    %2 = tpu.matmul %0, %1, %cst {dimension_numbers = #tpu.dot_dimension_numbers<[1], [0], [0], [1], [0, 0, 1, 1], [], []>} : vector<128x32xbf16>, vector<32x1024xbf16>, vector<128x1024xf32> -> vector<128x1024xf32>
    %c0_3 = arith.constant 0 : index
    %c0_4 = arith.constant 0 : index
    %3 = vector.load %arg3[%c0_3, %c0_4] : memref<1x1024xf32, #tpu.memory_space<vmem>>, vector<1x1024xf32>
    %4 = vector.broadcast %3 : vector<1x1024xf32> to vector<128x1024xf32>
    %5 = arith.addf %2, %4 : vector<128x1024xf32>
    %cst_5 = arith.constant 0.000000e+00 : f32
    %6 = vector.broadcast %cst_5 : f32 to vector<128x1024xf32>
    %7 = arith.maximumf %5, %6 : vector<128x1024xf32>
    %8 = arith.truncf %7 : vector<128x1024xf32> to vector<128x1024xbf16>
    %c0_6 = arith.constant 0 : index
    %c0_7 = arith.constant 0 : index
    %9 = vector.load %arg4[%c0_6, %c0_7] : memref<1024x256xbf16, #tpu.memory_space<vmem>>, vector<1024x256xbf16>
    %cst_8 = arith.constant dense<0.000000e+00> : vector<128x256xf32>
    %10 = tpu.matmul %8, %9, %cst_8 {dimension_numbers = #tpu.dot_dimension_numbers<[1], [0], [0], [1], [0, 0, 1, 1], [], []>} : vector<128x1024xbf16>, vector<1024x256xbf16>, vector<128x256xf32> -> vector<128x256xf32>
    %c0_9 = arith.constant 0 : index
    %c0_10 = arith.constant 0 : index
    %11 = vector.load %arg5[%c0_9, %c0_10] : memref<1x256xf32, #tpu.memory_space<vmem>>, vector<1x256xf32>
    %12 = vector.broadcast %11 : vector<1x256xf32> to vector<128x256xf32>
    %13 = arith.addf %10, %12 : vector<128x256xf32>
    %cst_11 = arith.constant 0.000000e+00 : f32
    %14 = vector.broadcast %cst_11 : f32 to vector<128x256xf32>
    %15 = arith.maximumf %13, %14 : vector<128x256xf32>
    %16 = arith.truncf %15 : vector<128x256xf32> to vector<128x256xbf16>
    %c0_12 = arith.constant 0 : index
    %c0_13 = arith.constant 0 : index
    %17 = vector.load %arg6[%c0_12, %c0_13] : memref<256x64xbf16, #tpu.memory_space<vmem>>, vector<256x64xbf16>
    %cst_14 = arith.constant dense<0.000000e+00> : vector<128x64xf32>
    %18 = tpu.matmul %16, %17, %cst_14 {dimension_numbers = #tpu.dot_dimension_numbers<[1], [0], [0], [1], [0, 0, 1, 1], [], []>} : vector<128x256xbf16>, vector<256x64xbf16>, vector<128x64xf32> -> vector<128x64xf32>
    %c0_15 = arith.constant 0 : index
    %c0_16 = arith.constant 0 : index
    %19 = vector.load %arg7[%c0_15, %c0_16] : memref<1x64xf32, #tpu.memory_space<vmem>>, vector<1x64xf32>
    %20 = vector.broadcast %19 : vector<1x64xf32> to vector<128x64xf32>
    %21 = arith.addf %18, %20 : vector<128x64xf32>
    %cst_17 = arith.constant 0.000000e+00 : f32
    %22 = vector.broadcast %cst_17 : f32 to vector<128x64xf32>
    %23 = arith.maximumf %21, %22 : vector<128x64xf32>
    %24 = arith.truncf %23 : vector<128x64xf32> to vector<128x64xbf16>
    %c0_18 = arith.constant 0 : index
    %c0_19 = arith.constant 0 : index
    %25 = vector.load %arg8[%c0_18, %c0_19] : memref<64x128xbf16, #tpu.memory_space<vmem>>, vector<64x128xbf16>
    %cst_20 = arith.constant dense<0.000000e+00> : vector<128x128xf32>
    %26 = tpu.matmul %24, %25, %cst_20 {dimension_numbers = #tpu.dot_dimension_numbers<[1], [0], [0], [1], [0, 0, 1, 1], [], []>} : vector<128x64xbf16>, vector<64x128xbf16>, vector<128x128xf32> -> vector<128x128xf32>
    %c0_21 = arith.constant 0 : index
    %c0_22 = arith.constant 0 : index
    %27 = vector.load %arg9[%c0_21, %c0_22] : memref<1x128xf32, #tpu.memory_space<vmem>>, vector<1x128xf32>
    %28 = vector.broadcast %27 : vector<1x128xf32> to vector<128x128xf32>
    %29 = arith.addf %26, %28 : vector<128x128xf32>
    %c0_23 = arith.constant 0 : index
    %c0_24 = arith.constant 0 : index
    %30 = vector.load %arg10[%c0_23, %c0_24] : memref<128x128xf32, #tpu.memory_space<vmem>>, vector<128x128xf32>
    tpu.vector_store %arg10[%c0_23, %c0_24], %29 {strides = array<i32>} : memref<128x128xf32, #tpu.memory_space<vmem>>, vector<128x128xf32>,
    return
  }
  func.func @transform_0(%arg0: i32) -> (i32, i32) {
    %c0_i32 = arith.constant 0 : i32
    %c0_i32_0 = arith.constant 0 : i32
    return %arg0, %c0_i32 : i32, i32
  }
  func.func @transform_1(%arg0: i32) -> (i32, i32) {
    %c0_i32 = arith.constant 0 : i32
    %c0_i32_0 = arith.constant 0 : i32
    %c0_i32_1 = arith.constant 0 : i32
    return %c0_i32, %c0_i32_0 : i32, i32
  }
  func.func @transform_2(%arg0: i32) -> (i32, i32) {
    %c0_i32 = arith.constant 0 : i32
    %c0_i32_0 = arith.constant 0 : i32
    %c0_i32_1 = arith.constant 0 : i32
    return %c0_i32, %c0_i32_0 : i32, i32
  }
  func.func @transform_3(%arg0: i32) -> (i32, i32) {
    %c0_i32 = arith.constant 0 : i32
    %c0_i32_0 = arith.constant 0 : i32
    %c0_i32_1 = arith.constant 0 : i32
    return %c0_i32, %c0_i32_0 : i32, i32
  }
  func.func @transform_4(%arg0: i32) -> (i32, i32) {
    %c0_i32 = arith.constant 0 : i32
    %c0_i32_0 = arith.constant 0 : i32
    %c0_i32_1 = arith.constant 0 : i32
    return %c0_i32, %c0_i32_0 : i32, i32
  }
  func.func @transform_5(%arg0: i32) -> (i32, i32) {
    %c0_i32 = arith.constant 0 : i32
    %c0_i32_0 = arith.constant 0 : i32
    %c0_i32_1 = arith.constant 0 : i32
    return %c0_i32, %c0_i32_0 : i32, i32
  }
  func.func @transform_6(%arg0: i32) -> (i32, i32) {
    %c0_i32 = arith.constant 0 : i32
    %c0_i32_0 = arith.constant 0 : i32
    %c0_i32_1 = arith.constant 0 : i32
    return %c0_i32, %c0_i32_0 : i32, i32
  }
  func.func @transform_7(%arg0: i32) -> (i32, i32) {
    %c0_i32 = arith.constant 0 : i32
    %c0_i32_0 = arith.constant 0 : i32
    %c0_i32_1 = arith.constant 0 : i32
    return %c0_i32, %c0_i32_0 : i32, i32
  }
  func.func @transform_8(%arg0: i32) -> (i32, i32) {
    %c0_i32 = arith.constant 0 : i32
    %c0_i32_0 = arith.constant 0 : i32
    %c0_i32_1 = arith.constant 0 : i32
    return %c0_i32, %c0_i32_0 : i32, i32
  }
  func.func @transform_9(%arg0: i32) -> (i32, i32) {
    %c0_i32 = arith.constant 0 : i32
    %c0_i32_0 = arith.constant 0 : i32
    return %arg0, %c0_i32 : i32, i32
  }
}

</mosaic_0001>

<bundles_post_ra>
// kernel: tpu_custom_call.1
= control target key start
LH: loop header
LB: loop body
LE: loop exit
PB: predicated region body
PF: predicated region fallthrough
CT: control target
= control target key end

     0   :  { %14 = vsyncpa [#allocation3], 0  ;;  %s4605_s0 = inlined_call_operand.vmem [shape: bf16[256,32], index: 0, kind: input, shape index: {}]   ;;  %s4606_s1 = inlined_call_operand.vmem [shape: bf16[32,1024], index: 1, kind: input, shape index: {}]   ;;  %s4607_s2 = inlined_call_operand.vmem [shape: f32[1,1024], index: 2, kind: input, shape index: {}]   ;;  %s4608_s3 = inlined_call_operand.hbm [shape: bf16[1024,256], index: 3, kind: input, shape index: {}]   ;;  %s4609_s4 = inlined_call_operand.vmem [shape: f32[1,256], index: 4, kind: input, shape index: {}]   ;;  %s4610_s5 = inlined_call_operand.vmem [shape: bf16[256,64], index: 5, kind: input, shape index: {}]   ;;  %s4611_s6 = inlined_call_operand.vmem [shape: f32[1,64], index: 6, kind: input, shape index: {}]   ;;  %s4612_s7 = inlined_call_operand.vmem [shape: bf16[64,128], index: 7, kind: input, shape index: {}]   ;;  %s4613_s8 = inlined_call_operand.vmem [shape: f32[1,128], index: 8, kind: input, shape index: {}]   ;;  %s4614_s9 = inlined_call_operand.hbm [shape: f32[256,128], index: 9, kind: output, shape index: {}]  }
   0x1   :  { %15 = vsyncpa [#allocation4], 0 }
   0x2   :  { %17 = vsyncpa [#allocation4 + $0x1], 0  ;;  %s3771_s30 = smov 0   ;;  %s3773_s10 = smov 0  }
   0x3   :  { %s3775_s11 = smov 0   ;;  %s3777_s12 = smov 0  }
   0x4 LB: > { %s3792_s13 = sadd.s32 4294967295, %s3712_s12   ;;  %s3014_s14 = sadd.s32 4294967294, %s3712_s12   ;;  %s3712_s12 = sphi %s3777_s12, %s4648_s12   ;;  %s3708_s11 = sphi %s3775_s11, %s4647_s11   ;;  %s3704_s10 = sphi %s3773_s10, %s4646_s10   ;;  %s3700_s30 = sphi %s3771_s30, %s4645_s30  }
   0x5   : > { %s3796_s15 = sadd.s32 1, %s3712_s12   ;;  %s224_s16 = sadd.s32 1, %s3708_s11 }
   0x6   : > { %s221_s17 = ssub.s32 %s3712_s12, %s3796_s15  ;;  %p234_p0 = scmp.ne.s32.totalorder %s3708_s11, %s3704_s10 }
   0x7   : > { %p222_p1 = scmp.eq.s32.totalorder %s221_s17, 0  ;;  %p235_p2 = scmp.eq.s32.totalorder %s3792_s13, 1 }
   0x8   : > { %p240_p3 = scmp.ne.s32.totalorder %s3704_s10, %s3700_s30  ;;  %p241_p4 = scmp.eq.s32.totalorder %s3014_s14, 1 }
   0x9   : > { %s3807_s18 = scalar_select %p222_p1, %s3708_s11, %s224_s16  }
   0xa   : > { %p3809_p5 = por %p235_p2, %p234_p0  ;;  %p3813_p6 = por %p241_p4, %p240_p3 }
   0xb   : > { %p3015_p7 = scmp.ge.s32.totalorder %s3712_s12, 1  ;;  %p248_p8 = scmp.lt.s32.totalorder %s3712_s12, 3 }
   0xc   : > { %s4616_s20 = scalar_select %p3813_p6, 1, 0 }
   0xd   : > { %p3361_p9 = scmp.eq.s32.totalorder %s3792_s13, 0  ;;  %p3820_p10 = pnand %p3015_p7, %p248_p8 }
   0xe   : > { %s3714_s22 = smov [#allocation2]  }
   0xf   : > { %s266_s23 = sshll.u32 %s3714_s22, 4  ;;  %p3353_p11 = pneg %p3820_p10  ;;  %s267_s23 = int_to_ptr.vmem [resolvable:$true] %s266_s23 }
  0x10   : > { %s3633_s24 = scalar_lea.vmem %s267_s23, 16384  ;;  %p3641_p3 = scmp.lt.s32.totalorder %s267_s23, %s267_s23 }
  0x11   : > { %p3354_p12 = pnand %p3361_p9, %p3353_p11  ;;  %p3634_p0 = scmp.ne.s32.totalorder %s267_s23, %s3633_s24 }
  0x12   : > { %p3642_p4 = scmp.lt.s32.totalorder %s3633_s24, %s3633_s24 }
  0x13   : > { %p3624_p13 = pneg %p3354_p12 }
  0x14   : > { %p3643_p6 = por %p3642_p4, %p3641_p3 }
  0x15   : > { %p3636_p1 = pnand %p3634_p0, %p3624_p13 }
  0x17   : > { %p3637_p2 = pneg %p3636_p1 }
  0x19   : > { %p3644_p7 = pnand %p3643_p6, %p3637_p2 }
  0x1b   : > { %3647 = shalt.err (!%p3644_p7)
}
  0x1c   : > { %s3715_s25 = smov 128   ;;  %s3716_s26 = smov 8  }
  0x1d   : > { %3356 = dma.hbm_to_vmem [thread:$0]  (!%p3354_p12), %s4608_s3, 16384, %s267_s23, [#allocation3], %s3715_s25, %s3715_s25, %s3716_s26  }
  0x1e   : > { %306 = sbr.rel (%p3820_p10) target bundleno = 1019 (0x3fb), region = 56 }
  0x23   : > { %3691 = dma.done.wait (%p3361_p9), [#allocation3], 16384  }
  0x24   : > { %3693 = vsyncadd (%p3361_p9), [#allocation3], 4294950912  ;;  %s3021_s29 = sshll.u32 %s3792_s13, 4  ;;  %v3717_v0 = vmov 0   ;;  %v374_v1 = vld [vmem:[%s4606_s1 + $0x40] sm:$0xff]  ;;  %v375_v8 = vld [vmem:[%s4606_s1 + $0x48] sm:$0xff] }
  0x25   : > { %601 = vmatprep.mubr.bf16.mxu0 %v3717_v0  ;;  %661 = vmatprep.mubr.bf16.mxu1 %v3717_v0  ;;  %p343_p6 = scmp.lt.s32.totalorder %s3021_s29, 31  ;;  %v378_v2 = vld [vmem:[%s4606_s1 + $0x60] sm:$0xff]  ;;  %v379_v9 = vld [vmem:[%s4606_s1 + $0x68] sm:$0xff]  ;;  %vm544_vm0 = vcmask 261120   ;;  %v377_v18 = vld [vmem:[%s4606_s1 + $0x58] sm:$0xff]  ;;  %vm2788_vm1 = vcmask 523264  }
  0x26   : > { %v366_v3 = vld [vmem:[%s4606_s1] sm:$0xff]  ;;  %v3040_v4 = vcombine.high %v374_v1, %v378_v2  ;;  %v3039_v5 = vcombine.low %v374_v1, %v378_v2  ;;  %v3042_v11 = vcombine.high %v375_v8, %v379_v9  ;;  %v367_v12 = vld [vmem:[%s4606_s1 + $0x8] sm:$0xff]  ;;  %v3041_v16 = vcombine.low %v375_v8, %v379_v9  ;;  %v376_v19 = vld [vmem:[%s4606_s1 + $0x50] sm:$0xff]  ;;  %s339_s16 = sand.u32 1, %s3704_s10  }
  0x27   : > { %s4650_s29 = smov (!%p343_p6, %s3021_s29), 31  ;;  %v370_v6 = vld [vmem:[%s4606_s1 + $0x20] sm:$0xff]  ;;  %v371_v13 = vld [vmem:[%s4606_s1 + $0x28] sm:$0xff]  ;;  %v380_v20 = vld [vmem:[%s4606_s1 + $0x70] sm:$0xff]  ;;  %s3020_s17 = sshll.u32 %s339_s16, 7 }
  0x28   : > { %s3022_s14 = sshll.u32 %s4650_s29, 2  ;;  %v3032_v7 = vcombine.high %v366_v3, %v370_v6  ;;  %581 = vmatprep.subr.bf16.mxu0 %v3040_v4  ;;  %3343 = vmatprep.subr.bf16.mxu1 %v3040_v4  ;;  %v3031_v10 = vcombine.low %v366_v3, %v370_v6  ;;  %v3034_v17 = vcombine.high %v367_v12, %v371_v13  ;;  %v381_v21 = vld [vmem:[%s4606_s1 + $0x78] sm:$0xff]  ;;  %v368_v25 = vld [vmem:[%s4606_s1 + $0x10] sm:$0xff]  ;;  %v3415_v44 = vld [vmem:[#allocation2 + $0x64] ss:$8 sps:$4 sm:$0xff]   ;;  %s4536_s22 = scalar_lea.vmem [#allocation5], %s3020_s17 }
  0x29   : > { %s3852_s27 = scalar_lea.vmem %s4605_s0, %s3022_s14  ;;  %582 = vmatpush1.bf16.msra.mxu0 %v3039_v5  ;;  %3345 = vmatpush1.bf16.msra.mxu1 %v3039_v5  ;;  %v3044_v22 = vcombine.high %v376_v19, %v380_v20  ;;  %v3043_v23 = vcombine.low %v376_v19, %v380_v20  ;;  %v3033_v24 = vcombine.low %v367_v12, %v371_v13  ;;  %v372_v29 = vld [vmem:[%s4606_s1 + $0x30] sm:$0xff]  ;;  %v369_v33 = vld [vmem:[%s4606_s1 + $0x18] sm:$0xff]  ;;  %v3413_v45 = vld [vmem:[#allocation2 + $0x60] ss:$8 sps:$4 sm:$0xff]   ;;  %s3242_s14 = sshll.u32 %s3792_s13, 11 }
  0x2a   : > { %583 = vmatprep.subr.bf16.mxu0 %v3032_v7  ;;  %3344 = vmatprep.subr.bf16.mxu1 %v3032_v7  ;;  %v3870_v14 = vld [vmem:[%s3852_s27] sm:$0xff]   ;;  %v3873_v15 = vld [vmem:[%s3852_s27 + $0x30] sm:$0xff]   ;;  %v3897_v26 = vld [vmem:[%s3852_s27 + $0x8] sm:$0xff]   ;;  %v3046_v28 = vcombine.high %v377_v18, %v381_v21  ;;  %v3036_v30 = vcombine.high %v368_v25, %v372_v29  ;;  %v3035_v31 = vcombine.low %v368_v25, %v372_v29  ;;  %s2940_s23 = sshll.u32 %s4536_s22, 4  ;;  %s4557_s26 = scalar_lea.hbm %s4614_s9, %s3242_s14  ;;  %s4559_s23 = int_to_ptr.vmem [resolvable:$true] %s2940_s23 }
  0x2b   : > { %v3900_v27 = vld [vmem:[%s3852_s27 + $0x38] sm:$0xff]   ;;  %v3918_v35 = vld [vmem:[%s3852_s27 + $0x10] sm:$0xff]   ;;  %v3045_v36 = vcombine.low %v377_v18, %v381_v21  ;;  %v3936_v41 = vld [vmem:[%s3852_s27 + $0x20] sm:$0xff]   ;;  %s4565_s13 = scalar_lea.sflag [#allocation4], %s339_s16  ;;  %s3648_s28 = scalar_lea.vmem %s4559_s23, 2048 }
  0x2c   : > { %v3412_v32 = vld [vmem:[#allocation2 + $0x74] ss:$8 sps:$4 sm:$0xff]   ;;  %v3945_v42 = vld [vmem:[%s3852_s27 + $0x28] sm:$0xff]   ;;  %v3410_v43 = vld [vmem:[#allocation2 + $0x70] ss:$8 sps:$4 sm:$0xff]   ;;  %p3649_p8 = scmp.ne.s32.totalorder %s4559_s23, %s3648_s28  ;;  %s3718_s29 = smov [#allocation5]  }
  0x2d   : > { %584 = vmatpush1.bf16.msra.mxu0 %v3031_v10  ;;  %3346 = vmatpush1.bf16.msra.mxu1 %v3031_v10  ;;  %v373_v34 = vld [vmem:[%s4606_s1 + $0x38] sm:$0xff]  ;;  %v3421_v48 = vld [vmem:[#allocation2 + $0x44] ss:$8 sps:$4 sm:$0xff]   ;;  %v3419_v49 = vld [vmem:[#allocation2 + $0x40] ss:$8 sps:$4 sm:$0xff]   ;;  %s3652_s17 = sshll.u32 %s3718_s29, 4  ;;  %s3653_s17 = int_to_ptr.vmem [resolvable:$false] %s3652_s17 }
  0x2e   : > { %694 = vmatprep.subr.bf16.mxu1 %v3042_v11  ;;  %807 = vmatprep.subr.bf16.mxu0 %v3044_v22  ;;  %v3038_v37 = vcombine.high %v369_v33, %v373_v34  ;;  %v3037_v38 = vcombine.low %v369_v33, %v373_v34  ;;  %v3427_v39 = vld [vmem:[#allocation2 + $0x174] ss:$8 sps:$4 sm:$0xff]   ;;  %v3416_v47 = vld [vmem:[#allocation2 + $0x50] ss:$8 sps:$4 sm:$0xff]   ;;  %v3430_v52 = vld [vmem:[#allocation2 + $0x24] ss:$8 sps:$4 sm:$0xff]   ;;  %p3650_p9 = pnand %p3649_p8, %p3809_p5  ;;  %p3655_p11 = scmp.lt.s32.totalorder %s4559_s23, %s3653_s17 }
  0x2f   : > { %v3927_v40 = vld [vmem:[%s3852_s27 + $0x18] sm:$0xff]   ;;  %v3428_v53 = vld [vmem:[#allocation2 + $0x20] ss:$8 sps:$4 sm:$0xff]   ;;  %v3442_v56 = vld [vmem:[#allocation2 + $0x4] ss:$8 sps:$4 sm:$0xff]   ;;  %s3654_s27 = scalar_lea.vmem %s3653_s17, 4096 }
  0x30   : > { %3047 = vmatmul.mubr.msk.bf16.vlgmr.msra.gmra.mxu0 %vm544_vm0, %v3870_v14  ;;  %3053 = vmatmul.mubr.msk.bf16.vlgmr.msra.gmra.mxu1 %vm544_vm0, %v3873_v15  ;;  %v3418_v46 = vld [vmem:[#allocation2 + $0x54] ss:$8 sps:$4 sm:$0xff]   ;;  %v3422_v51 = vld [vmem:[#allocation2 + $0x30] ss:$8 sps:$4 sm:$0xff]   ;;  %v3440_v57 = vld [vmem:[#allocation2] ss:$8 sps:$4 sm:$0xff]   ;;  %p3651_p10 = pneg %p3650_p9  ;;  %p3656_p12 = scmp.lt.s32.totalorder %s3654_s27, %s3648_s28 }
  0x31   : > { %695 = vmatpush1.bf16.msra.mxu1 %v3041_v16  ;;  %611 = vmatprep.mubr.bf16.mxu0 %v3717_v0  ;;  %v3424_v50 = vld [vmem:[#allocation2 + $0x34] ss:$8 sps:$4 sm:$0xff]   ;;  %v3434_v55 = vld [vmem:[#allocation2 + $0x10] ss:$8 sps:$4 sm:$0xff]   ;;  %v3433_v61 = vld [vmem:[#allocation2 + $0x164] ss:$8 sps:$4 sm:$0xff]  }
  0x32   : > { %671 = vmatprep.mubr.bf16.mxu1 %v3717_v0  ;;  %696 = vmatprep.subr.bf16.mxu1 %v3034_v17  ;;  %v3436_v54 = vld [vmem:[#allocation2 + $0x14] ss:$8 sps:$4 sm:$0xff]   ;;  %v3425_v59 = vld [vmem:[#allocation2 + $0x170] ss:$8 sps:$4 sm:$0xff]   ;;  %v3454_v62 = vld [vmem:[#allocation2 + $0xe4] ss:$8 sps:$4 sm:$0xff]   ;;  %p3657_p13 = por %p3656_p12, %p3655_p11 }
  0x33   : > { %808 = vmatpush1.bf16.msra.mxu0 %v3043_v23  ;;  %v3448_v58 = vld [vmem:[#allocation2 + $0xf4] ss:$8 sps:$4 sm:$0xff]   ;;  %v3446_v60 = vld [vmem:[#allocation2 + $0xf0] ss:$8 sps:$4 sm:$0xff]   ;;  %v3431_v63 = vld [vmem:[#allocation2 + $0x160] ss:$8 sps:$4 sm:$0xff]  }
  0x34   : > { %809 = vmatprep.subr.bf16.mxu0 %v3036_v30  ;;  %v3452_v1 = vld [vmem:[#allocation2 + $0xe0] ss:$8 sps:$4 sm:$0xff]   ;;  %v3439_v2 = vld [vmem:[#allocation2 + $0x154] ss:$8 sps:$4 sm:$0xff]   ;;  %v3437_v4 = vld [vmem:[#allocation2 + $0x150] ss:$8 sps:$4 sm:$0xff]   ;;  %p3658_p0 = pnand %p3657_p13, %p3651_p10 }
  0x35   : > { %697 = vmatpush1.bf16.msra.mxu1 %v3033_v24  ;;  %v3460_v3 = vld [vmem:[#allocation2 + $0xd4] ss:$8 sps:$4 sm:$0xff]   ;;  %v3458_v5 = vld [vmem:[#allocation2 + $0xd0] ss:$8 sps:$4 sm:$0xff]   ;;  %v3445_v6 = vld [vmem:[#allocation2 + $0x144] ss:$8 sps:$4 sm:$0xff]  }
  0x36   : > { %920 = vmatprep.subr.bf16.mxu1 %v3046_v28  ;;  %v3466_v7 = vld [vmem:[#allocation2 + $0xc4] ss:$8 sps:$4 sm:$0xff]   ;;  %v3443_v8 = vld [vmem:[#allocation2 + $0x140] ss:$8 sps:$4 sm:$0xff]   ;;  %v3451_v10 = vld [vmem:[#allocation2 + $0x134] ss:$8 sps:$4 sm:$0xff]  }
  0x37   : > { %810 = vmatpush1.bf16.msra.mxu0 %v3035_v31  ;;  %v3464_v9 = vld [vmem:[#allocation2 + $0xc0] ss:$8 sps:$4 sm:$0xff]   ;;  %v3472_v11 = vld [vmem:[#allocation2 + $0xb4] ss:$8 sps:$4 sm:$0xff]   ;;  %v3449_v12 = vld [vmem:[#allocation2 + $0x130] ss:$8 sps:$4 sm:$0xff]  }
  0x38   : > { %3048 = vmatmul.mubr.msk.bf16.gmra.mxu0 %vm544_vm0, %v3897_v26  ;;  %3054 = vmatmul.mubr.msk.bf16.gmra.mxu1 %vm544_vm0, %v3900_v27  ;;  %v3470_v13 = vld [vmem:[#allocation2 + $0xb0] ss:$8 sps:$4 sm:$0xff]   ;;  %v3478_v16 = vld [vmem:[#allocation2 + $0xa4] ss:$8 sps:$4 sm:$0xff]   ;;  %v3455_v17 = vld [vmem:[#allocation2 + $0x120] ss:$8 sps:$4 sm:$0xff]  }
  0x39   : > { %621 = vmatprep.mubr.bf16.mxu0 %v3717_v0  ;;  %714 = vmatprep.mubr.bf16.mxu1 %v3717_v0  ;;  %v3476_v18 = vld [vmem:[#allocation2 + $0xa0] ss:$8 sps:$4 sm:$0xff]   ;;  %v3463_v19 = vld [vmem:[#allocation2 + $0x114] ss:$8 sps:$4 sm:$0xff]   ;;  %v3461_v21 = vld [vmem:[#allocation2 + $0x110] ss:$8 sps:$4 sm:$0xff]  }
  0x3a   : > { %1993 = vmatprep.subr.bf16.mxu0 %v3412_v32  ;;  %v3484_v20 = vld [vmem:[#allocation2 + $0x94] ss:$8 sps:$4 sm:$0xff]   ;;  %v3482_v22 = vld [vmem:[#allocation2 + $0x90] ss:$8 sps:$4 sm:$0xff]   ;;  %v3469_v23 = vld [vmem:[#allocation2 + $0x104] ss:$8 sps:$4 sm:$0xff]  }
  0x3b   : > { %v3490_v24 = vld [vmem:[#allocation2 + $0x84] ss:$8 sps:$4 sm:$0xff]   ;;  %v3467_v25 = vld [vmem:[#allocation2 + $0x100] ss:$8 sps:$4 sm:$0xff]   ;;  %v3475_v28 = vld [vmem:[#allocation2 + $0x1f4] ss:$8 sps:$4 sm:$0xff]  }
  0x3c   : > { %v3499_v29 = vld [vmem:[#allocation2 + $0x274] ss:$8 sps:$4 sm:$0xff]   ;;  %v3473_v30 = vld [vmem:[#allocation2 + $0x1f0] ss:$8 sps:$4 sm:$0xff]   ;;  %v3481_v31 = vld [vmem:[#allocation2 + $0x1e4] ss:$8 sps:$4 sm:$0xff]  }
  0x3d   : > { %v3479_v32 = vld [vmem:[#allocation2 + $0x1e0] ss:$8 sps:$4 sm:$0xff]   ;;  %v3487_v33 = vld [vmem:[#allocation2 + $0x1d4] ss:$8 sps:$4 sm:$0xff]   ;;  %v3485_v34 = vld [vmem:[#allocation2 + $0x1d0] ss:$8 sps:$4 sm:$0xff]  }
  0x40   : > { %3049 = vmatmul.mubr.msk.bf16.gmra.mxu0 %vm544_vm0, %v3918_v35  ;;  %3055 = vmatmul.mubr.msk.bf16.vlgmr.msra.gmra.mxu1 %vm544_vm0, %v3870_v14 }
  0x41   : > { %921 = vmatpush1.bf16.msra.mxu1 %v3045_v36  ;;  %631 = vmatprep.mubr.bf16.mxu0 %v3717_v0  ;;  %v3491_v36 = vld [vmem:[#allocation2 + $0x1c0] ss:$8 sps:$4 sm:$0xff]  }
  0x42   : > { %724 = vmatprep.mubr.bf16.mxu1 %v3717_v0  ;;  %922 = vmatprep.subr.bf16.mxu1 %v3038_v37  ;;  %v3496_v37 = vld [vmem:[#allocation2 + $0x1b4] ss:$8 sps:$4 sm:$0xff]  }
  0x45   : > { %923 = vmatpush1.bf16.msra.mxu1 %v3037_v38  ;;  %v3494_v38 = vld [vmem:[#allocation2 + $0x1b0] ss:$8 sps:$4 sm:$0xff]  }
  0x46   : > { %2106 = vmatprep.subr.bf16.mxu1 %v3427_v39  ;;  %v3502_v39 = vld [vmem:[#allocation2 + $0x1a4] ss:$8 sps:$4 sm:$0xff]  }
  0x48   : > { %3050 = vmatmul.mubr.msk.bf16.gmra.mxu0 %vm544_vm0, %v3927_v40  ;;  %3056 = vmatmul.mubr.msk.bf16.gmra.mxu1 %vm544_vm0, %v3897_v26 }
  0x49   : > { %641 = vmatprep.mubr.bf16.mxu0 %v3717_v0  ;;  %734 = vmatprep.mubr.bf16.mxu1 %v3717_v0 }
  0x50   : > { %3051 = vmatmul.mubr.msk.bf16.gmra.mxu0 %vm544_vm0, %v3936_v41  ;;  %3057 = vmatmul.mubr.msk.bf16.gmra.mxu1 %vm544_vm0, %v3918_v35 }
  0x51   : > { %651 = vmatprep.mubr.bf16.mxu0 %v3717_v0  ;;  %744 = vmatprep.mubr.bf16.mxu1 %v3717_v0 }
  0x58   : > { %3052 = vmatmul.mubr.msk.bf16.gmra.mxu0 %vm544_vm0, %v3945_v42  ;;  %3058 = vmatmul.mubr.msk.bf16.gmra.mxu1 %vm544_vm0, %v3927_v40 }
  0x59   : > { %754 = vmatprep.mubr.bf16.mxu1 %v3717_v0  ;;  %827 = vmatprep.mubr.bf16.mxu0 %v3717_v0 }
  0x60   : > { %3059 = vmatmul.mubr.msk.bf16.gmra.mxu1 %vm544_vm0, %v3936_v41  ;;  %3063 = vmatmul.mubr.msk.bf16.vlgmr.msra.gmra.mxu0 %vm544_vm0, %v3870_v14 }
  0x61   : > { %764 = vmatprep.mubr.bf16.mxu1 %v3717_v0  ;;  %837 = vmatprep.mubr.bf16.mxu0 %v3717_v0 }
  0x62   : > { %1994 = vmatpush1.bf16.msra.mxu0 %v3410_v43  ;;  %v3514_v43 = vld [vmem:[#allocation2 + $0x184] ss:$8 sps:$4 sm:$0xff]  }
  0x63   : > { %1995 = vmatprep.subr.bf16.mxu0 %v3415_v44  ;;  %v3512_v44 = vld [vmem:[#allocation2 + $0x180] ss:$8 sps:$4 sm:$0xff]  }
  0x66   : > { %1996 = vmatpush1.bf16.msra.mxu0 %v3413_v45  ;;  %v3523_v45 = vld [vmem:[#allocation2 + $0x374] ss:$8 sps:$4 sm:$0xff]  }
  0x67   : > { %1997 = vmatprep.subr.bf16.mxu0 %v3418_v46 }
  0x68   : > { %3060 = vmatmul.mubr.msk.bf16.gmra.mxu1 %vm544_vm0, %v3945_v42  ;;  %3064 = vmatmul.mubr.msk.bf16.gmra.mxu0 %vm544_vm0, %v3897_v26 }
  0x69   : > { %774 = vmatprep.mubr.bf16.mxu1 %v3717_v0  ;;  %847 = vmatprep.mubr.bf16.mxu0 %v3717_v0 }
  0x6a   : > { %1998 = vmatpush1.bf16.msra.mxu0 %v3416_v47  ;;  %v4017_v47 = vld [vmem:[%s4607_s2] sm:$0xff] }
  0x6b   : > { %1999 = vmatprep.subr.bf16.mxu0 %v3421_v48 }
  0x6e   : > { %2000 = vmatpush1.bf16.msra.mxu0 %v3419_v49 }
  0x6f   : > { %2001 = vmatprep.subr.bf16.mxu0 %v3424_v50 }
  0x70   : > { %3061 = vmatmul.mubr.msk.bf16.gmra.mxu1 %vm544_vm0, %v3873_v15  ;;  %3065 = vmatmul.mubr.msk.bf16.gmra.mxu0 %vm544_vm0, %v3918_v35 }
  0x71   : > { %784 = vmatprep.mubr.bf16.mxu1 %v3717_v0  ;;  %857 = vmatprep.mubr.bf16.mxu0 %v3717_v0 }
  0x72   : > { %2002 = vmatpush1.bf16.msra.mxu0 %v3422_v51 }
  0x73   : > { %2003 = vmatprep.subr.bf16.mxu0 %v3430_v52 }
  0x76   : > { %2004 = vmatpush1.bf16.msra.mxu0 %v3428_v53 }
  0x77   : > { %2005 = vmatprep.subr.bf16.mxu0 %v3436_v54 }
  0x78   : > { %3062 = vmatmul.mubr.msk.bf16.gmra.mxu1 %vm544_vm0, %v3900_v27  ;;  %3066 = vmatmul.mubr.msk.bf16.gmra.mxu0 %vm544_vm0, %v3927_v40 }
  0x79   : > { %940 = vmatprep.mubr.bf16.mxu1 %v3717_v0  ;;  %867 = vmatprep.mubr.bf16.mxu0 %v3717_v0 }
  0x7a   : > { %2006 = vmatpush1.bf16.msra.mxu0 %v3434_v55 }
  0x7b   : > { %2007 = vmatprep.subr.bf16.mxu0 %v3442_v56 }
  0x7e   : > { %2008 = vmatpush1.bf16.msra.mxu0 %v3440_v57 }
  0x7f   : > { %2009 = vmatprep.subr.bf16.mxu0 %v3448_v58 }
  0x80   : > { %3071 = vmatmul.mubr.msk.bf16.vlgmr.msra.gmra.mxu1 %vm544_vm0, %v3870_v14  ;;  %3067 = vmatmul.mubr.msk.bf16.gmra.mxu0 %vm544_vm0, %v3936_v41  ;;  %v3457_v14 = vld [vmem:[#allocation2 + $0x124] ss:$8 sps:$4 sm:$0xff]  }
  0x81   : > { %950 = vmatprep.mubr.bf16.mxu1 %v3717_v0  ;;  %877 = vmatprep.mubr.bf16.mxu0 %v3717_v0 }
  0x82   : > { %2107 = vmatpush1.bf16.msra.mxu1 %v3425_v59  ;;  %2010 = vmatpush2.bf16.msra.mxu0 %v3446_v60 }
  0x83   : > { %2108 = vmatprep.subr.bf16.mxu1 %v3433_v61  ;;  %2011 = vmatprep.subr.bf16.mxu0 %v3454_v62 }
  0x86   : > { %2109 = vmatpush1.bf16.msra.mxu1 %v3431_v63  ;;  %2012 = vmatpush2.bf16.msra.mxu0 %v3452_v1 }
  0x87   : > { %2110 = vmatprep.subr.bf16.mxu1 %v3439_v2  ;;  %2013 = vmatprep.subr.bf16.mxu0 %v3460_v3 }
  0x88   : > { %3072 = vmatmul.mubr.msk.bf16.gmra.mxu1 %vm544_vm0, %v3897_v26  ;;  %3068 = vmatmul.mubr.msk.bf16.gmra.mxu0 %vm544_vm0, %v3945_v42  ;;  %v3488_v26 = vld [vmem:[#allocation2 + $0x80] ss:$8 sps:$4 sm:$0xff]  }
  0x89   : > { %960 = vmatprep.mubr.bf16.mxu1 %v3717_v0  ;;  %887 = vmatprep.mubr.bf16.mxu0 %v3717_v0 }
  0x8a   : > { %2111 = vmatpush1.bf16.msra.mxu1 %v3437_v4  ;;  %2014 = vmatpush2.bf16.msra.mxu0 %v3458_v5 }
  0x8b   : > { %2112 = vmatprep.subr.bf16.mxu1 %v3445_v6  ;;  %2015 = vmatprep.subr.bf16.mxu0 %v3466_v7 }
  0x8e   : > { %2113 = vmatpush1.bf16.msra.mxu1 %v3443_v8  ;;  %2016 = vmatpush2.bf16.msra.mxu0 %v3464_v9 }
  0x8f   : > { %2114 = vmatprep.subr.bf16.mxu1 %v3451_v10  ;;  %2017 = vmatprep.subr.bf16.mxu0 %v3472_v11  ;;  %v3497_v11 = vld [vmem:[#allocation2 + $0x270] ss:$8 sps:$4 sm:$0xff]  }
  0x90   : > { %3073 = vmatmul.mubr.msk.bf16.gmra.mxu1 %vm544_vm0, %v3918_v35  ;;  %3069 = vmatmul.mubr.msk.bf16.gmra.mxu0 %vm544_vm0, %v3873_v15  ;;  %v3493_v35 = vld [vmem:[#allocation2 + $0x1c4] ss:$8 sps:$4 sm:$0xff]  }
  0x91   : > { %970 = vmatprep.mubr.bf16.mxu1 %v3717_v0  ;;  %897 = vmatprep.mubr.bf16.mxu0 %v3717_v0 }
  0x92   : > { %2115 = vmatpush1.bf16.msra.mxu1 %v3449_v12  ;;  %2018 = vmatpush2.bf16.msra.mxu0 %v3470_v13 }
  0x93   : > { %2116 = vmatprep.subr.bf16.mxu1 %v3457_v14  ;;  %2019 = vmatprep.subr.bf16.mxu0 %v3478_v16  ;;  %v3505_v14 = vld [vmem:[#allocation2 + $0x264] ss:$8 sps:$4 sm:$0xff]  }
  0x96   : > { %2117 = vmatpush1.bf16.msra.mxu1 %v3455_v17  ;;  %2020 = vmatpush2.bf16.msra.mxu0 %v3476_v18 }
  0x97   : > { %2118 = vmatprep.subr.bf16.mxu1 %v3463_v19  ;;  %2021 = vmatprep.subr.bf16.mxu0 %v3484_v20 }
  0x98   : > { %3074 = vmatmul.mubr.msk.bf16.gmra.mxu1 %vm544_vm0, %v3927_v40  ;;  %3070 = vmatmul.mubr.msk.bf16.gmra.mxu0 %vm544_vm0, %v3900_v27  ;;  %v3500_v40 = vld [vmem:[#allocation2 + $0x1a0] ss:$8 sps:$4 sm:$0xff]  }
  0x99   : > { %980 = vmatprep.mubr.bf16.mxu1 %v3717_v0 }
  0x9a   : > { %2119 = vmatpush1.bf16.msra.mxu1 %v3461_v21  ;;  %2022 = vmatpush2.bf16.msra.mxu0 %v3482_v22 }
  0x9b   : > { %2120 = vmatprep.subr.bf16.mxu1 %v3469_v23  ;;  %2023 = vmatprep.subr.bf16.mxu0 %v3490_v24 }
  0x9e   : > { %2121 = vmatpush1.bf16.msra.mxu1 %v3467_v25  ;;  %2024 = vmatpush2.bf16.msra.mxu0 %v3488_v26  ;;  %v3503_v25 = vld [vmem:[#allocation2 + $0x260] ss:$8 sps:$4 sm:$0xff]  }
  0x9f   : > { %2122 = vmatprep.subr.bf16.mxu1 %v3475_v28  ;;  %2219 = vmatprep.subr.bf16.mxu0 %v3499_v29  ;;  %v3511_v29 = vld [vmem:[#allocation2 + $0x254] ss:$8 sps:$4 sm:$0xff]  }
  0xa0   : > { %3075 = vmatmul.mubr.msk.bf16.gmra.mxu1 %vm544_vm0, %v3936_v41  ;;  %v3508_v41 = vld [vmem:[#allocation2 + $0x194] ss:$8 sps:$4 sm:$0xff]  }
  0xa1   : > { %990 = vmatprep.mubr.bf16.mxu1 %v3717_v0 }
  0xa2   : > { %2123 = vmatpush2.bf16.msra.mxu1 %v3473_v30 }
  0xa3   : > { %2124 = vmatprep.subr.bf16.mxu1 %v3481_v31 }
  0xa6   : > { %2125 = vmatpush2.bf16.msra.mxu1 %v3479_v32 }
  0xa7   : > { %2126 = vmatprep.subr.bf16.mxu1 %v3487_v33 }
  0xa8   : > { %3076 = vmatmul.mubr.msk.bf16.gmra.mxu1 %vm544_vm0, %v3945_v42  ;;  %v3506_v42 = vld [vmem:[#allocation2 + $0x190] ss:$8 sps:$4 sm:$0xff]  }
  0xa9   : > { %1000 = vmatprep.mubr.bf16.mxu1 %v3717_v0 }
  0xaa   : > { %2127 = vmatpush2.bf16.msra.mxu1 %v3485_v34 }
  0xab   : > { %2128 = vmatprep.subr.bf16.mxu1 %v3493_v35 }
  0xae   : > { %2129 = vmatpush2.bf16.msra.mxu1 %v3491_v36 }
  0xaf   : > { %2130 = vmatprep.subr.bf16.mxu1 %v3496_v37 }
  0xb0   : > { %3077 = vmatmul.mubr.msk.bf16.gmra.mxu1 %vm544_vm0, %v3873_v15  ;;  %v384_v15 = vlaneseq }
  0xb1   : > { %1010 = vmatprep.mubr.bf16.mxu1 %v3717_v0 }
  0xb2   : > { %2131 = vmatpush2.bf16.msra.mxu1 %v3494_v38  ;;  %v4011_v46 = vshrl.u32 %v384_v15, 7 }
  0xb3   : > { %2132 = vmatprep.subr.bf16.mxu1 %v3502_v39  ;;  %v3509_v39 = vld [vmem:[#allocation2 + $0x250] ss:$8 sps:$4 sm:$0xff]  }
  0xb4   : > { %v386_v0 = vsub.s32 0, %v4011_v46  ;;  %v390_v48 = vsub.s32 1, %v4011_v46  ;;  %v398_v17 = vsub.s32 3, %v4011_v46  ;;  %v394_v21 = vsub.s32 2, %v4011_v46 }
  0xb6   : > { %2133 = vmatpush2.bf16.msra.mxu1 %v3500_v40  ;;  %v4030_v51 = vrot.slane %v4017_v47, %v390_v48  ;;  %v4057_v31 = vrot.slane %v4017_v47, %v398_v17  ;;  %v4061_v34 = vrot.slane %v4017_v47, %v394_v21 }
  0xb7   : > { %2134 = vmatprep.subr.bf16.mxu1 %v3508_v41 }
  0xb8   : > { %3078 = vmatmul.mubr.msk.bf16.gmra.mxu1 %vm544_vm0, %v3900_v27  ;;  %v4023_v27 = vrot.slane %v4017_v47, %v386_v0 }
  0xba   : > { %2135 = vmatpush2.bf16.msra.mxu1 %v3506_v42  ;;  %v3517_v42 = vld [vmem:[#allocation2 + $0x244] ss:$8 sps:$4 sm:$0xff]  }
  0xbb   : > { %2136 = vmatprep.subr.bf16.mxu1 %v3514_v43 }
  0xbe   : > { %2137 = vmatpush2.bf16.msra.mxu1 %v3512_v44 }
  0xbf   : > { %2332 = vmatprep.subr.bf16.mxu1 %v3523_v45 }
  0xf0   : > { %v603_v49 = vpop.f32.mrf.mxu0  ;;  %v4025_v50 = vpop.f32.mrf.mxu1 }
  0xf1   : > { %v604_v52 = vadd.f32 %v603_v49, %v4023_v27 }
  0xf2   : > { %v605_v53 = vpop.f32.mrf.mxu0  ;;  %v4033_v54 = vpop.f32.mrf.mxu1 }
  0xf3   : > { %v606_v55 = vadd.f32 %v605_v53, %v4030_v51  ;;  %v1021_v59 = vmax.f32 %v604_v52, 0.0 }
  0xf4   : > { %v607_v56 = vpop.f32.mrf.mxu0  ;;  %v4036_v57 = vpop.f32.mrf.mxu1 }
  0xf5   : > { %v608_v58 = vadd.f32 %v607_v56, %v4023_v27  ;;  %v1022_v62 = vmax.f32 %v606_v55, 0.0 }
  0xf6   : > { %v609_v60 = vpop.f32.mrf.mxu0  ;;  %v4039_v61 = vpop.f32.mrf.mxu1 }
  0xf7   : > { %v1029_v63 = vmax.f32 %v608_v58, 0.0  ;;  %v610_v1 = vadd.f32 %v609_v60, %v4030_v51  ;;  %v3515_v60 = vld [vmem:[#allocation2 + $0x240] ss:$8 sps:$4 sm:$0xff]  }
  0xf8   : > { %v613_v2 = vpop.f32.mrf.mxu0  ;;  %v4042_v3 = vpop.f32.mrf.mxu1 }
  0xf9   : > { %v1030_v4 = vmax.f32 %v610_v1, 0.0  ;;  %v1149_v5 = vpack.c.bf16 %v1029_v63, %v1021_v59  ;;  %v614_v6 = vadd.f32 %v613_v2, %v4023_v27  ;;  %v3520_v2 = vld [vmem:[#allocation2 + $0x234] ss:$8 sps:$4 sm:$0xff]  }
  0xfa   : > { %v615_v7 = vpop.f32.mrf.mxu0  ;;  %v4045_v8 = vpop.f32.mrf.mxu1 }
  0xfb   : > { %v616_v9 = vadd.f32 %v615_v7, %v4030_v51  ;;  %v1150_v10 = vpack.c.bf16 %v1030_v4, %v1022_v62  ;;  %v1037_v18 = vmax.f32 %v614_v6, 0.0 }
  0xfc   : > { %v617_v12 = vpop.f32.mrf.mxu0  ;;  %v4048_v13 = vpop.f32.mrf.mxu1 }
  0xfd   : > { %v618_v16 = vadd.f32 %v617_v12, %v4023_v27  ;;  %2025 = vmatprep.mubr.bf16.mxu0 %v1150_v10  ;;  %v1038_v22 = vmax.f32 %v616_v9, 0.0 }
  0xfe   : > { %v619_v19 = vpop.f32.mrf.mxu0  ;;  %v4052_v20 = vpop.f32.mrf.mxu1  ;;  %2026 = vmatmul.mubr.bf16.vlgmr.msra.gmra.mxu0 %v1149_v5 }
  0xff   : > { %v1045_v23 = vmax.f32 %v618_v16, 0.0  ;;  %v620_v24 = vadd.f32 %v619_v19, %v4030_v51  ;;  %2220 = vmatpush1.bf16.msra.mxu0 %v3497_v11  ;;  %v3521_v19 = vld [vmem:[#allocation2 + $0x370] ss:$8 sps:$4 sm:$0xff]  }
 0x100   : > { %v623_v26 = vpop.f32.mrf.mxu0  ;;  %v716_v28 = vpop.f32.mrf.mxu1  ;;  %2221 = vmatprep.subr.bf16.mxu0 %v3505_v14 }
 0x101   : > { %v1046_v30 = vmax.f32 %v620_v24, 0.0  ;;  %v1157_v32 = vpack.c.bf16 %v1045_v23, %v1037_v18  ;;  %v624_v33 = vadd.f32 %v623_v26, %v4023_v27  ;;  %v717_v49 = vadd.f32 %v716_v28, %v4061_v34  ;;  %v3518_v18 = vld [vmem:[#allocation2 + $0x230] ss:$8 sps:$4 sm:$0xff]   ;;  %v3526_v24 = vld [vmem:[#allocation2 + $0x224] ss:$8 sps:$4 sm:$0xff]  }
 0x102   : > { %v625_v35 = vpop.f32.mrf.mxu0  ;;  %v718_v36 = vpop.f32.mrf.mxu1 }
 0x103   : > { %v626_v37 = vadd.f32 %v625_v35, %v4030_v51  ;;  %2222 = vmatpush1.bf16.msra.mxu0 %v3503_v25  ;;  %v1158_v38 = vpack.c.bf16 %v1046_v30, %v1038_v22  ;;  %v719_v43 = vadd.f32 %v718_v36, %v4057_v31  ;;  %v1053_v15 = vmax.f32 %v624_v33, 0.0  ;;  %v3529_v25 = vld [vmem:[#allocation2 + $0x364] ss:$8 sps:$4 sm:$0xff]  }
 0x104   : > { %v627_v40 = vpop.f32.mrf.mxu0  ;;  %v720_v41 = vpop.f32.mrf.mxu1  ;;  %2223 = vmatprep.subr.bf16.mxu0 %v3511_v29  ;;  %v1023_v7 = vmax.f32 %v717_v49, 0.0 }
 0x105   : > { %v628_v44 = vadd.f32 %v627_v40, %v4023_v27  ;;  %v721_v45 = vadd.f32 %v720_v41, %v4061_v34  ;;  %2035 = vmatprep.mubr.bf16.mxu0 %v1158_v38  ;;  %v1054_v55 = vmax.f32 %v626_v37, 0.0  ;;  %v1024_v4 = vmax.f32 %v719_v43, 0.0  ;;  %v3524_v40 = vld [vmem:[#allocation2 + $0x220] ss:$8 sps:$4 sm:$0xff]  }
 0x106   : > { %v629_v52 = vpop.f32.mrf.mxu0  ;;  %v722_v53 = vpop.f32.mrf.mxu1  ;;  %2036 = vmatmul.mubr.bf16.gmra.mxu0 %v1157_v32  ;;  %v3527_v41 = vld [vmem:[#allocation2 + $0x360] ss:$8 sps:$4 sm:$0xff]  }
 0x107   : > { %v1061_v56 = vmax.f32 %v628_v44, 0.0  ;;  %v630_v58 = vadd.f32 %v629_v52, %v4030_v51  ;;  %v723_v59 = vadd.f32 %v722_v53, %v4057_v31  ;;  %2224 = vmatpush1.bf16.msra.mxu0 %v3509_v39  ;;  %v1031_v62 = vmax.f32 %v721_v45, 0.0  ;;  %v3532_v44 = vld [vmem:[#allocation2 + $0x214] ss:$8 sps:$4 sm:$0xff]  }
 0x108   : > { %v633_v63 = vpop.f32.mrf.mxu0  ;;  %v726_v1 = vpop.f32.mrf.mxu1  ;;  %2225 = vmatprep.subr.bf16.mxu0 %v3517_v42  ;;  %v3535_v45 = vld [vmem:[#allocation2 + $0x354] ss:$8 sps:$4 sm:$0xff]  }
 0x109   : > { %v1062_v5 = vmax.f32 %v630_v58, 0.0  ;;  %v1032_v6 = vmax.f32 %v723_v59, 0.0  ;;  %v1165_v9 = vpack.c.bf16 %v1061_v56, %v1053_v15  ;;  %v634_v10 = vadd.f32 %v633_v63, %v4023_v27 }
 0x10a   : > { %v635_v11 = vpop.f32.mrf.mxu0  ;;  %v728_v12 = vpop.f32.mrf.mxu1  ;;  %v1151_v21 = vpack.c.bf16 %v1031_v62, %v1023_v7  ;;  %v727_v30 = vadd.f32 %v726_v1, %v4061_v34  ;;  %v3530_v1 = vld [vmem:[#allocation2 + $0x210] ss:$8 sps:$4 sm:$0xff]   ;;  %v3538_v7 = vld [vmem:[#allocation2 + $0x204] ss:$8 sps:$4 sm:$0xff]  }
 0x10b   : > { %v636_v14 = vadd.f32 %v635_v11, %v4030_v51  ;;  %2226 = vmatpush1.bf16.msra.mxu0 %v3515_v60  ;;  %v1166_v16 = vpack.c.bf16 %v1062_v5, %v1054_v55  ;;  %v1152_v17 = vpack.c.bf16 %v1032_v6, %v1024_v4  ;;  %v1069_v29 = vmax.f32 %v634_v10, 0.0  ;;  %v3533_v6 = vld [vmem:[#allocation2 + $0x350] ss:$8 sps:$4 sm:$0xff]  }
 0x10c   : > { %v637_v22 = vpop.f32.mrf.mxu0  ;;  %v730_v23 = vpop.f32.mrf.mxu1  ;;  %2227 = vmatprep.subr.bf16.mxu0 %v3520_v2  ;;  %v729_v32 = vadd.f32 %v728_v12, %v4057_v31  ;;  %v1039_v60 = vmax.f32 %v727_v30, 0.0  ;;  %v3539_v30 = vld [vmem:[#allocation2 + $0x340] ss:$8 sps:$4 sm:$0xff]  }
 0x10d   : > { %v638_v26 = vadd.f32 %v637_v22, %v4023_v27  ;;  %v731_v28 = vadd.f32 %v730_v23, %v4061_v34  ;;  %2045 = vmatprep.mubr.bf16.mxu0 %v1166_v16  ;;  %2138 = vmatprep.mubr.bf16.mxu1 %v1152_v17  ;;  %v1070_v36 = vmax.f32 %v636_v14, 0.0  ;;  %v3541_v14 = vld [vmem:[#allocation2 + $0x344] ss:$8 sps:$4 sm:$0xff]  }
 0x10e   : > { %v639_v33 = vpop.f32.mrf.mxu0  ;;  %v732_v35 = vpop.f32.mrf.mxu1  ;;  %2046 = vmatmul.mubr.bf16.gmra.mxu0 %v1165_v9  ;;  %2139 = vmatmul.mubr.bf16.vlgmr.msra.gmra.mxu1 %v1151_v21  ;;  %v1040_v53 = vmax.f32 %v729_v32, 0.0  ;;  %v3544_v32 = vld [vmem:[#allocation2 + $0x2f4] ss:$8 sps:$4 sm:$0xff]  }
 0x10f   : > { %v1077_v37 = vmax.f32 %v638_v26, 0.0  ;;  %v640_v38 = vadd.f32 %v639_v33, %v4030_v51  ;;  %v733_v39 = vadd.f32 %v732_v35, %v4057_v31  ;;  %2228 = vmatpush1.bf16.msra.mxu0 %v3518_v18  ;;  %2333 = vmatpush1.bf16.msra.mxu1 %v3521_v19  ;;  %v1047_v15 = vmax.f32 %v731_v28, 0.0 }
 0x110   : > { %v643_v42 = vpop.f32.mrf.mxu0  ;;  %v736_v43 = vpop.f32.mrf.mxu1  ;;  %2229 = vmatprep.subr.bf16.mxu0 %v3526_v24  ;;  %2334 = vmatprep.subr.bf16.mxu1 %v3529_v25  ;;  %v3536_v25 = vld [vmem:[#allocation2 + $0x200] ss:$8 sps:$4 sm:$0xff]  }
 0x111   : > { %v1078_v49 = vmax.f32 %v640_v38, 0.0  ;;  %v1048_v52 = vmax.f32 %v733_v39, 0.0  ;;  %v1173_v55 = vpack.c.bf16 %v1077_v37, %v1069_v29  ;;  %v644_v56 = vadd.f32 %v643_v42, %v4023_v27  ;;  %v3547_v42 = vld [vmem:[#allocation2 + $0x334] ss:$8 sps:$4 sm:$0xff]  }
 0x112   : > { %v645_v58 = vpop.f32.mrf.mxu0  ;;  %v738_v59 = vpop.f32.mrf.mxu1  ;;  %v1159_v9 = vpack.c.bf16 %v1047_v15, %v1039_v60  ;;  %v737_v17 = vadd.f32 %v736_v43, %v4061_v34  ;;  %v3542_v15 = vld [vmem:[#allocation2 + $0x2f0] ss:$8 sps:$4 sm:$0xff]  }
 0x113   : > { %v646_v62 = vadd.f32 %v645_v58, %v4030_v51  ;;  %2230 = vmatpush1.bf16.msra.mxu0 %v3524_v40  ;;  %2335 = vmatpush1.bf16.msra.mxu1 %v3527_v41  ;;  %v1174_v63 = vpack.c.bf16 %v1078_v49, %v1070_v36  ;;  %v1160_v5 = vpack.c.bf16 %v1048_v52, %v1040_v53  ;;  %v1085_v16 = vmax.f32 %v644_v56, 0.0  ;;  %v3545_v56 = vld [vmem:[#allocation2 + $0x330] ss:$8 sps:$4 sm:$0xff]   ;;  %v3550_v58 = vld [vmem:[#allocation2 + $0x2e4] ss:$8 sps:$4 sm:$0xff]  }
 0x114   : > { %v647_v2 = vpop.f32.mrf.mxu0  ;;  %v740_v4 = vpop.f32.mrf.mxu1  ;;  %2231 = vmatprep.subr.bf16.mxu0 %v3532_v44  ;;  %2336 = vmatprep.subr.bf16.mxu1 %v3535_v45  ;;  %v739_v10 = vadd.f32 %v738_v59, %v4057_v31  ;;  %v1055_v37 = vmax.f32 %v737_v17, 0.0  ;;  %v670_v49 = vadd.f32 %v4039_v61, %v4030_v51 }
 0x115   : > { %v648_v11 = vadd.f32 %v647_v2, %v4023_v27  ;;  %v741_v12 = vadd.f32 %v740_v4, %v4061_v34  ;;  %2055 = vmatprep.mubr.bf16.mxu0 %v1174_v63  ;;  %2148 = vmatprep.mubr.bf16.mxu1 %v1160_v5  ;;  %v1086_v21 = vmax.f32 %v646_v62, 0.0  ;;  %v3553_v63 = vld [vmem:[#allocation2 + $0x324] ss:$8 sps:$4 sm:$0xff]  }
 0x116   : > { %v649_v18 = vpop.f32.mrf.mxu0  ;;  %v742_v19 = vpop.f32.mrf.mxu1  ;;  %2056 = vmatmul.mubr.bf16.gmra.mxu0 %v1173_v55  ;;  %2149 = vmatmul.mubr.bf16.gmra.mxu1 %v1159_v9  ;;  %v1056_v33 = vmax.f32 %v739_v10, 0.0 }
 0x117   : > { %v1093_v22 = vmax.f32 %v648_v11, 0.0  ;;  %v650_v23 = vadd.f32 %v649_v18, %v4030_v51  ;;  %v743_v24 = vadd.f32 %v742_v19, %v4057_v31  ;;  %2232 = vmatpush1.bf16.msra.mxu0 %v3530_v1  ;;  %v1063_v26 = vmax.f32 %v741_v12, 0.0  ;;  %2337 = vmatpush1.bf16.msra.mxu1 %v3533_v6  ;;  %v3548_v11 = vld [vmem:[#allocation2 + $0x2e0] ss:$8 sps:$4 sm:$0xff]  }
 0x118   : > { %v653_v28 = vpop.f32.mrf.mxu0  ;;  %v746_v29 = vpop.f32.mrf.mxu1  ;;  %2233 = vmatprep.subr.bf16.mxu0 %v3538_v7  ;;  %2338 = vmatprep.subr.bf16.mxu1 %v3541_v14  ;;  %v666_v1 = vadd.f32 %v4033_v54, %v4030_v51  ;;  %v1126_v12 = vmax.f32 %v670_v49, 0.0  ;;  %v3551_v54 = vld [vmem:[#allocation2 + $0x320] ss:$8 sps:$4 sm:$0xff]  }
 0x119   : > { %v1094_v35 = vmax.f32 %v650_v23, 0.0  ;;  %v1064_v36 = vmax.f32 %v743_v24, 0.0  ;;  %v1181_v38 = vpack.c.bf16 %v1093_v22, %v1085_v16  ;;  %v654_v39 = vadd.f32 %v653_v28, %v4023_v27  ;;  %v3556_v16 = vld [vmem:[#allocation2 + $0x2d4] ss:$8 sps:$4 sm:$0xff]  }
 0x11a   : > { %v655_v40 = vpop.f32.mrf.mxu0  ;;  %v748_v41 = vpop.f32.mrf.mxu1  ;;  %v1167_v52 = vpack.c.bf16 %v1063_v26, %v1055_v37  ;;  %v747_v2 = vadd.f32 %v746_v29, %v4061_v34  ;;  %v1118_v23 = vmax.f32 %v666_v1, 0.0  ;;  %v3559_v26 = vld [vmem:[#allocation2 + $0x314] ss:$8 sps:$4 sm:$0xff]  }
 0x11b   : > { %v656_v43 = vadd.f32 %v655_v40, %v4030_v51  ;;  %2234 = vmatpush1.bf16.msra.mxu0 %v3536_v25  ;;  %v1182_v44 = vpack.c.bf16 %v1094_v35, %v1086_v21  ;;  %v1168_v45 = vpack.c.bf16 %v1064_v36, %v1056_v33  ;;  %2339 = vmatpush1.bf16.msra.mxu1 %v3539_v30  ;;  %v1101_v61 = vmax.f32 %v654_v39, 0.0  ;;  %v3557_v39 = vld [vmem:[#allocation2 + $0x310] ss:$8 sps:$4 sm:$0xff]  }
 0x11c   : > { %v657_v53 = vpop.f32.mrf.mxu0  ;;  %v750_v55 = vpop.f32.mrf.mxu1  ;;  %2235 = vmatprep.subr.bf16.mxu0 %v3544_v32  ;;  %v749_v59 = vadd.f32 %v748_v41, %v4057_v31  ;;  %2340 = vmatprep.subr.bf16.mxu1 %v3547_v42  ;;  %v1071_v29 = vmax.f32 %v747_v2, 0.0  ;;  %v406_v33 = vsub.s32 5, %v4011_v46  ;;  %v668_v35 = vadd.f32 %v4036_v57, %v4023_v27  ;;  %v3565_v57 = vld [vmem:[#allocation2 + $0x304] ss:$8 sps:$4 sm:$0xff]  }
 0x11d   : > { %v658_v60 = vadd.f32 %v657_v53, %v4023_v27  ;;  %v751_v62 = vadd.f32 %v750_v55, %v4061_v34  ;;  %2065 = vmatprep.mubr.bf16.mxu0 %v1182_v44  ;;  %2158 = vmatprep.mubr.bf16.mxu1 %v1168_v45  ;;  %v1102_v6 = vmax.f32 %v656_v43, 0.0  ;;  %v680_v36 = vadd.f32 %v4052_v20, %v4030_v51  ;;  %v3562_v45 = vld [vmem:[#allocation2 + $0x2c4] ss:$8 sps:$4 sm:$0xff]  }
 0x11e   : > { %v659_v4 = vpop.f32.mrf.mxu0  ;;  %v752_v5 = vpop.f32.mrf.mxu1  ;;  %2066 = vmatmul.mubr.bf16.gmra.mxu0 %v1181_v38  ;;  %2159 = vmatmul.mubr.bf16.gmra.mxu1 %v1167_v52  ;;  %v1072_v18 = vmax.f32 %v749_v59, 0.0  ;;  %v3554_v38 = vld [vmem:[#allocation2 + $0x2d0] ss:$8 sps:$4 sm:$0xff]   ;;  %v1198_v40 = vpack.c.bf16 %v1126_v12, %v1118_v23  ;;  %v664_v20 = vadd.f32 %v4025_v50, %v4023_v27 }
 0x11f   : > { %v1109_v7 = vmax.f32 %v658_v60, 0.0  ;;  %v660_v9 = vadd.f32 %v659_v4, %v4030_v51  ;;  %v753_v10 = vadd.f32 %v752_v5, %v4057_v31  ;;  %2236 = vmatpush2.bf16.msra.mxu0 %v3542_v15  ;;  %2341 = vmatpush1.bf16.msra.mxu1 %v3545_v56  ;;  %v1079_v19 = vmax.f32 %v751_v62, 0.0  ;;  %v3560_v60 = vld [vmem:[#allocation2 + $0x2c0] ss:$8 sps:$4 sm:$0xff]  }
 0x120   : > { %v756_v14 = vpop.f32.mrf.mxu1  ;;  %2237 = vmatprep.subr.bf16.mxu0 %v3550_v58  ;;  %v4098_v17 = vpop.f32.mrf.mxu0  ;;  %2342 = vmatprep.subr.bf16.mxu1 %v3553_v63  ;;  %v676_v15 = vadd.f32 %v4045_v8, %v4030_v51  ;;  %v4116_v56 = vrot.slane %v4017_v47, %v406_v33  ;;  %v1125_v58 = vmax.f32 %v668_v35, 0.0  ;;  %v1142_v59 = vmax.f32 %v680_v36, 0.0  ;;  %v3563_v51 = vld [vmem:[#allocation2 + $0x300] ss:$8 sps:$4 sm:$0xff]  }
 0x121   : > { %v1110_v21 = vmax.f32 %v660_v9, 0.0  ;;  %v1080_v22 = vmax.f32 %v753_v10, 0.0  ;;  %v1189_v24 = vpack.c.bf16 %v1109_v7, %v1101_v61  ;;  %v1175_v42 = vpack.c.bf16 %v1079_v19, %v1071_v29  ;;  %v3568_v61 = vld [vmem:[#allocation2 + $0x2b4] ss:$8 sps:$4 sm:$0xff]   ;;  %v3566_v19 = vld [vmem:[#allocation2 + $0x2b0] ss:$8 sps:$4 sm:$0xff]  }
 0x122   : > { %v758_v25 = vpop.f32.mrf.mxu1  ;;  %v831_v28 = vpop.f32.mrf.mxu0  ;;  %v757_v53 = vadd.f32 %v756_v14, %v4061_v34  ;;  %v1117_v2 = vmax.f32 %v664_v20, 0.0  ;;  %v1134_v4 = vmax.f32 %v676_v15, 0.0  ;;  %v402_v7 = vsub.s32 4, %v4011_v46  ;;  %v3577_v29 = vld [vmem:[#allocation2 + $0x3e4] ss:$8 sps:$4 sm:$0xff]  }
 0x123   : > { %2238 = vmatpush2.bf16.msra.mxu0 %v3548_v11  ;;  %v1190_v30 = vpack.c.bf16 %v1110_v21, %v1102_v6  ;;  %v1176_v32 = vpack.c.bf16 %v1080_v22, %v1072_v18  ;;  %2343 = vmatpush1.bf16.msra.mxu1 %v3551_v54  ;;  %v759_v43 = vadd.f32 %v758_v25, %v4057_v31  ;;  %v3571_v6 = vld [vmem:[#allocation2 + $0x3f4] ss:$8 sps:$4 sm:$0xff]   ;;  %v3569_v21 = vld [vmem:[#allocation2 + $0x3f0] ss:$8 sps:$4 sm:$0xff]  }
 0x124   : > { %v760_v37 = vpop.f32.mrf.mxu1  ;;  %2239 = vmatprep.subr.bf16.mxu0 %v3556_v16  ;;  %v4105_v41 = vpop.f32.mrf.mxu0  ;;  %2344 = vmatprep.subr.bf16.mxu1 %v3559_v26  ;;  %v1087_v10 = vmax.f32 %v757_v53, 0.0  ;;  %v832_v12 = vadd.f32 %v831_v28, %v4116_v56  ;;  %v1197_v54 = vpack.c.bf16 %v1125_v58, %v1117_v2  ;;  %v678_v16 = vadd.f32 %v4048_v13, %v4023_v27  ;;  %v3574_v28 = vld [vmem:[#allocation2 + $0x2a4] ss:$8 sps:$4 sm:$0xff]   ;;  %v3583_v53 = vld [vmem:[#allocation2 + $0x3d4] ss:$8 sps:$4 sm:$0xff]  }
 0x125   : > { %v761_v44 = vadd.f32 %v760_v37, %v4061_v34  ;;  %2075 = vmatprep.mubr.bf16.mxu0 %v1190_v30  ;;  %2168 = vmatprep.mubr.bf16.mxu1 %v1176_v32  ;;  %v1088_v62 = vmax.f32 %v759_v43, 0.0  ;;  %v1206_v22 = vpack.c.bf16 %v1142_v59, %v1134_v4  ;;  %v674_v13 = vadd.f32 %v4042_v3, %v4023_v27  ;;  %v3572_v27 = vld [vmem:[#allocation2 + $0x2a0] ss:$8 sps:$4 sm:$0xff]  }
 0x126   : > { %v762_v49 = vpop.f32.mrf.mxu1  ;;  %2076 = vmatmul.mubr.bf16.gmra.mxu0 %v1189_v24  ;;  %v835_v52 = vpop.f32.mrf.mxu0  ;;  %2169 = vmatmul.mubr.bf16.gmra.mxu1 %v1175_v42  ;;  %v4132_v32 = vrot.slane %v4017_v47, %v402_v7  ;;  %v1026_v37 = vmax.f32 %v832_v12, 0.0  ;;  %v3575_v3 = vld [vmem:[#allocation2 + $0x3e0] ss:$8 sps:$4 sm:$0xff]  }
 0x127   : > { %v763_v55 = vadd.f32 %v762_v49, %v4057_v31  ;;  %2085 = vmatprep.mubr.bf16.mxu0 %v1198_v40  ;;  %2240 = vmatpush2.bf16.msra.mxu0 %v3554_v38  ;;  %v1095_v63 = vmax.f32 %v761_v44, 0.0  ;;  %v836_v14 = vadd.f32 %v835_v52, %v4116_v56  ;;  %v1133_v20 = vmax.f32 %v674_v13, 0.0 }
 0x128   : > { %2345 = vmatpush1.bf16.msra.mxu1 %v3557_v39  ;;  %v766_v50 = vpop.f32.mrf.mxu1  ;;  %v4118_v8 = vpop.f32.mrf.mxu0  ;;  %2241 = vmatprep.subr.bf16.mxu0 %v3562_v45  ;;  %v1141_v39 = vmax.f32 %v678_v16, 0.0  ;;  %v830_v15 = vadd.f32 %v4098_v17, %v4132_v32  ;;  %v834_v52 = vadd.f32 %v4105_v41, %v4132_v32 }
 0x129   : > { %v1096_v1 = vmax.f32 %v763_v55, 0.0  ;;  %2346 = vmatprep.subr.bf16.mxu1 %v3565_v57  ;;  %v1183_v24 = vpack.c.bf16 %v1095_v63, %v1087_v10  ;;  %v767_v35 = vadd.f32 %v766_v50, %v4061_v34  ;;  %v1034_v38 = vmax.f32 %v836_v14, 0.0  ;;  %v3580_v57 = vld [vmem:[#allocation2 + $0x294] ss:$8 sps:$4 sm:$0xff]   ;;  %v3581_v63 = vld [vmem:[#allocation2 + $0x3d0] ss:$8 sps:$4 sm:$0xff]  }
 0x12a   : > { %v768_v5 = vpop.f32.mrf.mxu1  ;;  %v841_v9 = vpop.f32.mrf.mxu0  ;;  %v1025_v7 = vmax.f32 %v830_v15, 0.0  ;;  %v1033_v10 = vmax.f32 %v834_v52, 0.0  ;;  %v410_v15 = vsub.s32 6, %v4011_v46 }
 0x12b   : > { %v1184_v11 = vpack.c.bf16 %v1096_v1, %v1088_v62  ;;  %2242 = vmatpush2.bf16.msra.mxu0 %v3560_v60  ;;  %v769_v25 = vadd.f32 %v768_v5, %v4057_v31  ;;  %v1103_v58 = vmax.f32 %v767_v35, 0.0  ;;  %v1154_v50 = vpack.c.bf16 %v1034_v38, %v1026_v37  ;;  %v3578_v62 = vld [vmem:[#allocation2 + $0x290] ss:$8 sps:$4 sm:$0xff]   ;;  %v3586_v5 = vld [vmem:[#allocation2 + $0x284] ss:$8 sps:$4 sm:$0xff]  }
 0x12c   : > { %2347 = vmatpush1.bf16.msra.mxu1 %v3563_v51  ;;  %v770_v18 = vpop.f32.mrf.mxu1  ;;  %v4125_v23 = vpop.f32.mrf.mxu0  ;;  %2243 = vmatprep.subr.bf16.mxu0 %v3568_v61  ;;  %v1205_v60 = vpack.c.bf16 %v1141_v39, %v1133_v20  ;;  %v842_v1 = vadd.f32 %v841_v9, %v4116_v56  ;;  %v840_v35 = vadd.f32 %v4118_v8, %v4132_v32  ;;  %v3590_v39 = vld [vmem:[#allocation2 + $0x3b0] ss:$8 sps:$4 sm:$0xff]  }
 0x12d   : > { %v771_v26 = vadd.f32 %v770_v18, %v4061_v34  ;;  %2178 = vmatprep.mubr.bf16.mxu1 %v1184_v11  ;;  %2348 = vmatprep.subr.bf16.mxu1 %v3571_v6  ;;  %v1104_v43 = vmax.f32 %v769_v25, 0.0  ;;  %v3589_v6 = vld [vmem:[#allocation2 + $0x3c4] ss:$8 sps:$4 sm:$0xff]   ;;  %v3584_v18 = vld [vmem:[#allocation2 + $0x280] ss:$8 sps:$4 sm:$0xff]  }
 0x12e   : > { %v772_v30 = vpop.f32.mrf.mxu1  ;;  %2086 = vmatmul.mubr.bf16.gmra.mxu0 %v1197_v54  ;;  %v845_v33 = vpop.f32.mrf.mxu0  ;;  %2179 = vmatmul.mubr.bf16.gmra.mxu1 %v1183_v24  ;;  %v1042_v16 = vmax.f32 %v842_v1, 0.0 }
 0x12f   : > { %v773_v36 = vadd.f32 %v772_v30, %v4057_v31  ;;  %2095 = vmatprep.mubr.bf16.mxu0 %v1206_v22  ;;  %2244 = vmatpush2.bf16.msra.mxu0 %v3566_v19  ;;  %v1111_v44 = vmax.f32 %v771_v26, 0.0  ;;  %v846_v61 = vadd.f32 %v845_v33, %v4116_v56  ;;  %v3587_v19 = vld [vmem:[#allocation2 + $0x3c0] ss:$8 sps:$4 sm:$0xff]  }
 0x130   : > { %2349 = vmatpush2.bf16.msra.mxu1 %v3569_v21  ;;  %v776_v40 = vpop.f32.mrf.mxu1  ;;  %v4136_v42 = vpop.f32.mrf.mxu0  ;;  %2245 = vmatprep.subr.bf16.mxu0 %v3574_v28  ;;  %v3592_v28 = vld [vmem:[#allocation2 + $0x3b4] ss:$8 sps:$4 sm:$0xff]  }
 0x131   : > { %v1112_v45 = vmax.f32 %v773_v36, 0.0  ;;  %2350 = vmatprep.subr.bf16.mxu1 %v3577_v29  ;;  %v1191_v2 = vpack.c.bf16 %v1111_v44, %v1103_v58  ;;  %v777_v9 = vadd.f32 %v776_v40, %v4061_v34  ;;  %v1050_v21 = vmax.f32 %v846_v61, 0.0 }
 0x132   : > { %v778_v49 = vpop.f32.mrf.mxu1  ;;  %v851_v55 = vpop.f32.mrf.mxu0  ;;  %v1153_v29 = vpack.c.bf16 %v1033_v10, %v1025_v7  ;;  %v844_v36 = vadd.f32 %v4125_v23, %v4132_v32  ;;  %v414_v23 = vsub.s32 7, %v4011_v46  ;;  %v4176_v10 = vrot.slane %v4017_v47, %v410_v15 }
 0x133   : > { %v1192_v59 = vpack.c.bf16 %v1112_v45, %v1104_v43  ;;  %2246 = vmatpush2.bf16.msra.mxu0 %v3572_v27  ;;  %v779_v41 = vadd.f32 %v778_v49, %v4057_v31  ;;  %v1119_v33 = vmax.f32 %v777_v9, 0.0  ;;  %v852_v40 = vadd.f32 %v851_v55, %v4116_v56  ;;  %v3596_v9 = vld [vmem:[#allocation2 + $0x390] ss:$8 sps:$4 sm:$0xff]  }
 0x134   : > { %2351 = vmatpush2.bf16.msra.mxu1 %v3575_v3  ;;  %v780_v51 = vpop.f32.mrf.mxu1  ;;  %v4144_v17 = vpop.f32.mrf.mxu0  ;;  %2247 = vmatprep.subr.bf16.mxu0 %v3580_v57  ;;  %v1162_v27 = vpack.c.bf16 %v1050_v21, %v1042_v16  ;;  %v3595_v57 = vld [vmem:[#allocation2 + $0x3a4] ss:$8 sps:$4 sm:$0xff]   ;;  %v1049_v55 = vmax.f32 %v844_v36, 0.0 }
 0x135   : > { %v781_v4 = vadd.f32 %v780_v51, %v4061_v34  ;;  %2188 = vmatprep.mubr.bf16.mxu1 %v1192_v59  ;;  %2352 = vmatprep.subr.bf16.mxu1 %v3583_v53  ;;  %v1120_v24 = vmax.f32 %v779_v41, 0.0  ;;  %v1041_v53 = vmax.f32 %v840_v35, 0.0  ;;  %v3601_v21 = vld [vmem:[#allocation2 + $0x384] ss:$8 sps:$4 sm:$0xff]  }
 0x136   : > { %v782_v11 = vpop.f32.mrf.mxu1  ;;  %2096 = vmatmul.mubr.bf16.gmra.mxu0 %v1205_v60  ;;  %v855_v12 = vpop.f32.mrf.mxu0  ;;  %2189 = vmatmul.mubr.bf16.gmra.mxu1 %v1191_v2  ;;  %v3593_v60 = vld [vmem:[#allocation2 + $0x3a0] ss:$8 sps:$4 sm:$0xff]   ;;  %v4169_v2 = vrot.slane %v4017_v47, %v414_v23 }
 0x137   : > { %v783_v14 = vadd.f32 %v782_v11, %v4057_v31  ;;  %2251 = vmatprep.mubr.bf16.mxu0 %v1154_v50  ;;  %2248 = vmatpush2.bf16.msra.mxu0 %v3578_v62  ;;  %v1127_v25 = vmax.f32 %v781_v4, 0.0  ;;  %v856_v3 = vadd.f32 %v855_v12, %v4116_v56  ;;  %v1058_v50 = vmax.f32 %v852_v40, 0.0 }
 0x138   : > { %2353 = vmatpush2.bf16.msra.mxu1 %v3581_v63  ;;  %v786_v54 = vpop.f32.mrf.mxu1  ;;  %v4150_v22 = vpop.f32.mrf.mxu0  ;;  %2249 = vmatprep.subr.bf16.mxu0 %v3586_v5  ;;  %v854_v4 = vadd.f32 %v4144_v17, %v4132_v32  ;;  %v1161_v7 = vpack.c.bf16 %v1049_v55, %v1041_v53 }
 0x139   : > { %v1128_v26 = vmax.f32 %v783_v14, 0.0  ;;  %2354 = vmatprep.subr.bf16.mxu1 %v3589_v6  ;;  %v1199_v44 = vpack.c.bf16 %v1127_v25, %v1119_v33  ;;  %v787_v52 = vadd.f32 %v786_v54, %v4061_v34  ;;  %v1066_v51 = vmax.f32 %v856_v3, 0.0  ;;  %v3599_v33 = vld [vmem:[#allocation2 + $0x380] ss:$8 sps:$4 sm:$0xff]  }
 0x13a   : > { %v788_v13 = vpop.f32.mrf.mxu1  ;;  %v861_v30 = vpop.f32.mrf.mxu0 }
 0x13b   : > { %v1200_v37 = vpack.c.bf16 %v1128_v26, %v1120_v24  ;;  %2250 = vmatpush2.bf16.msra.mxu0 %v3584_v18  ;;  %v789_v45 = vadd.f32 %v788_v13, %v4057_v31  ;;  %v1135_v6 = vmax.f32 %v787_v52, 0.0  ;;  %v862_v14 = vadd.f32 %v861_v30, %v4116_v56 }
 0x13c   : > { %2355 = vmatpush2.bf16.msra.mxu1 %v3587_v19  ;;  %v790_v38 = vpop.f32.mrf.mxu1  ;;  %v4158_v43 = vpop.f32.mrf.mxu0  ;;  %v1170_v54 = vpack.c.bf16 %v1066_v51, %v1058_v50  ;;  %v1065_v24 = vmax.f32 %v854_v4, 0.0 }
 0x13d   : > { %v791_v8 = vadd.f32 %v790_v38, %v4061_v34  ;;  %2198 = vmatprep.mubr.bf16.mxu1 %v1200_v37  ;;  %2356 = vmatprep.subr.bf16.mxu1 %v3592_v28  ;;  %v1136_v63 = vmax.f32 %v789_v45, 0.0  ;;  %v3598_v34 = vld [vmem:[#allocation2 + $0x394] ss:$8 sps:$4 sm:$0xff]   ;;  %v1074_v30 = vmax.f32 %v862_v14, 0.0  ;;  %v864_v23 = vadd.f32 %v4158_v43, %v4132_v32 }
 0x13e   : > { %v792_v20 = vpop.f32.mrf.mxu1  ;;  %v865_v49 = vpop.f32.mrf.mxu0  ;;  %2199 = vmatmul.mubr.bf16.gmra.mxu1 %v1199_v44  ;;  %2252 = vmatmul.mubr.bf16.vlgmr.msra.gmra.mxu0 %v1153_v29 }
 0x13f   : > { %v793_v58 = vadd.f32 %v792_v20, %v4057_v31  ;;  %2261 = vmatprep.mubr.bf16.mxu0 %v1162_v27  ;;  %v1143_v1 = vmax.f32 %v791_v8, 0.0  ;;  %v850_v31 = vadd.f32 %v4136_v42, %v4132_v32  ;;  %v866_v16 = vadd.f32 %v865_v49, %v4116_v56 }
 0x140   : > { %2357 = vmatpush2.bf16.msra.mxu1 %v3590_v39  ;;  %v942_v59 = vpop.f32.mrf.mxu1  ;;  %v4166_v62 = vpop.f32.mrf.mxu0  ;;  %v860_v8 = vadd.f32 %v4150_v22, %v4132_v32  ;;  %v1081_v43 = vmax.f32 %v864_v23, 0.0 }
 0x141   : > { %v1144_v61 = vmax.f32 %v793_v58, 0.0  ;;  %2358 = vmatprep.subr.bf16.mxu1 %v3595_v57  ;;  %v1207_v18 = vpack.c.bf16 %v1143_v1, %v1135_v6  ;;  %v1057_v47 = vmax.f32 %v850_v31, 0.0  ;;  %v943_v28 = vadd.f32 %v942_v59, %v4176_v10 }
 0x142   : > { %v944_v41 = vpop.f32.mrf.mxu1  ;;  %v871_v5 = vpop.f32.mrf.mxu0  ;;  %v1082_v35 = vmax.f32 %v866_v16, 0.0  ;;  %v1073_v22 = vmax.f32 %v860_v8, 0.0 }
 0x143   : > { %v1208_v11 = vpack.c.bf16 %v1144_v61, %v1136_v63  ;;  %v945_v19 = vadd.f32 %v944_v41, %v4169_v2  ;;  %v1169_v40 = vpack.c.bf16 %v1065_v24, %v1057_v47  ;;  %v1027_v44 = vmax.f32 %v943_v28, 0.0 }
 0x144   : > { %2359 = vmatpush2.bf16.msra.mxu1 %v3593_v60  ;;  %v946_v12 = vpop.f32.mrf.mxu1  ;;  %v873_v42 = vpop.f32.mrf.mxu0  ;;  %v872_v20 = vadd.f32 %v871_v5, %v4116_v56  ;;  %v1178_v15 = vpack.c.bf16 %v1082_v35, %v1074_v30  ;;  %v870_v5 = vadd.f32 %v4166_v62, %v4132_v32 }
 0x145   : > { %v947_v17 = vadd.f32 %v946_v12, %v4176_v10  ;;  %2208 = vmatprep.mubr.bf16.mxu1 %v1208_v11  ;;  %2360 = vmatprep.subr.bf16.mxu1 %v3598_v34  ;;  %v1028_v37 = vmax.f32 %v945_v19, 0.0 }
 0x146   : > { %v948_v25 = vpop.f32.mrf.mxu1  ;;  %v875_v26 = vpop.f32.mrf.mxu0  ;;  %2209 = vmatmul.mubr.bf16.gmra.mxu1 %v1207_v18  ;;  %2262 = vmatmul.mubr.bf16.gmra.mxu0 %v1161_v7  ;;  %v1090_v1 = vmax.f32 %v872_v20, 0.0  ;;  %v874_v7 = vadd.f32 %v873_v42, %v4132_v32  ;;  %v1089_v62 = vmax.f32 %v870_v5, 0.0 }
 0x147   : > { %v949_v29 = vadd.f32 %v948_v25, %v4169_v2  ;;  %2271 = vmatprep.mubr.bf16.mxu0 %v1170_v54  ;;  %v1035_v38 = vmax.f32 %v947_v17, 0.0  ;;  %v876_v49 = vadd.f32 %v875_v26, %v4116_v56 }
 0x148   : > { %2361 = vmatpush2.bf16.msra.mxu1 %v3596_v9  ;;  %v952_v13 = vpop.f32.mrf.mxu1  ;;  %v4184_v36 = vpop.f32.mrf.mxu0  ;;  %v1177_v9 = vpack.c.bf16 %v1081_v43, %v1073_v22  ;;  %v1097_v25 = vmax.f32 %v874_v7, 0.0 }
 0x149   : > { %v1036_v39 = vmax.f32 %v949_v29, 0.0  ;;  %2362 = vmatprep.subr.bf16.mxu1 %v3601_v21  ;;  %v1155_v53 = vpack.c.bf16 %v1035_v38, %v1027_v44  ;;  %v953_v60 = vadd.f32 %v952_v13, %v4176_v10  ;;  %v1098_v61 = vmax.f32 %v876_v49, 0.0 }
 0x14a   : > { %v954_v27 = vpop.f32.mrf.mxu1  ;;  %v881_v3 = vpop.f32.mrf.mxu0  ;;  %v880_v8 = vadd.f32 %v4184_v36, %v4132_v32  ;;  %v3602_v36 = vld [vmem:[%s4610_s5 + $0x78] sm:$0xff]  }
 0x14b   : > { %v1156_v45 = vpack.c.bf16 %v1036_v39, %v1028_v37  ;;  %v955_v55 = vadd.f32 %v954_v27, %v4169_v2  ;;  %v1043_v12 = vmax.f32 %v953_v60, 0.0  ;;  %v1186_v16 = vpack.c.bf16 %v1098_v61, %v1090_v1  ;;  %3243 = vmatprep.subr.bf16.mxu0 %v3602_v36 }
 0x14c   : > { %2363 = vmatpush2.bf16.msra.mxu1 %v3599_v33  ;;  %v956_v57 = vpop.f32.mrf.mxu1  ;;  %v883_v52 = vpop.f32.mrf.mxu0  ;;  %v882_v18 = vadd.f32 %v881_v3, %v4116_v56  ;;  %v1105_v22 = vmax.f32 %v880_v8, 0.0 }
 0x14d   : > { %v957_v58 = vadd.f32 %v956_v57, %v4176_v10  ;;  %2364 = vmatprep.mubr.bf16.mxu1 %v1156_v45  ;;  %v1044_v31 = vmax.f32 %v955_v55, 0.0  ;;  %v884_v23 = vadd.f32 %v883_v52, %v4132_v32  ;;  %v3603_v52 = vld [vmem:[%s4610_s5 + $0x38] sm:$0xff]  }
 0x14e   : > { %v958_v59 = vpop.f32.mrf.mxu1  ;;  %v885_v50 = vpop.f32.mrf.mxu0  ;;  %2272 = vmatmul.mubr.bf16.gmra.mxu0 %v1169_v40  ;;  %v1106_v30 = vmax.f32 %v882_v18, 0.0  ;;  %v1185_v40 = vpack.c.bf16 %v1097_v25, %v1089_v62 }
 0x14f   : > { %v959_v51 = vadd.f32 %v958_v59, %v4169_v2  ;;  %2365 = vmatmul.mubr.bf16.vlgmr.msra.gmra.mxu1 %v1155_v53  ;;  %2281 = vmatprep.mubr.bf16.mxu0 %v1178_v15  ;;  %v1051_v41 = vmax.f32 %v957_v58, 0.0  ;;  %v886_v19 = vadd.f32 %v885_v50, %v4116_v56  ;;  %v1113_v43 = vmax.f32 %v884_v23, 0.0 }
 0x150   : > { %v962_v63 = vpop.f32.mrf.mxu1  ;;  %v4196_v34 = vpop.f32.mrf.mxu0  ;;  %3244 = vmatpush3.bf16.msra.mxu0 %v3603_v52 }
 0x151   : > { %v1052_v4 = vmax.f32 %v959_v51, 0.0  ;;  %v1163_v21 = vpack.c.bf16 %v1051_v41, %v1043_v12  ;;  %v963_v28 = vadd.f32 %v962_v63, %v4176_v10  ;;  %v1114_v33 = vmax.f32 %v886_v19, 0.0 }
 0x152   : > { %v964_v6 = vpop.f32.mrf.mxu1  ;;  %v891_v11 = vpop.f32.mrf.mxu0 }
 0x153   : > { %v1164_v14 = vpack.c.bf16 %v1052_v4, %v1044_v31  ;;  %v965_v47 = vadd.f32 %v964_v6, %v4169_v2  ;;  %v1059_v44 = vmax.f32 %v963_v28, 0.0  ;;  %v1194_v20 = vpack.c.bf16 %v1114_v33, %v1106_v30 }
 0x154   : > { %v966_v54 = vpop.f32.mrf.mxu1  ;;  %v893_v17 = vpop.f32.mrf.mxu0  ;;  %v892_v15 = vadd.f32 %v891_v11, %v4116_v56  ;;  %v890_v6 = vadd.f32 %v4196_v34, %v4132_v32 }
 0x155   : > { %v967_v24 = vadd.f32 %v966_v54, %v4176_v10  ;;  %2374 = vmatprep.mubr.bf16.mxu1 %v1164_v14  ;;  %v1060_v37 = vmax.f32 %v965_v47, 0.0  ;;  %v894_v11 = vadd.f32 %v893_v17, %v4132_v32  ;;  %v3604_v17 = vld [vmem:[%s4610_s5 + $0x70] sm:$0xff]  }
 0x156   : > { %v968_v42 = vpop.f32.mrf.mxu1  ;;  %v895_v26 = vpop.f32.mrf.mxu0  ;;  %2282 = vmatmul.mubr.bf16.gmra.mxu0 %v1177_v9  ;;  %v1122_v1 = vmax.f32 %v892_v15, 0.0  ;;  %v1193_v9 = vpack.c.bf16 %v1113_v43, %v1105_v22  ;;  %v1121_v62 = vmax.f32 %v890_v6, 0.0  ;;  %3245 = vmatprep.subr.bf16.mxu0 %v3604_v17 }
 0x157   : > { %v969_v29 = vadd.f32 %v968_v42, %v4169_v2  ;;  %2375 = vmatmul.mubr.bf16.gmra.mxu1 %v1163_v21  ;;  %2291 = vmatprep.mubr.bf16.mxu0 %v1186_v16  ;;  %v1067_v38 = vmax.f32 %v967_v24, 0.0  ;;  %v896_v49 = vadd.f32 %v895_v26, %v4116_v56  ;;  %v1129_v34 = vmax.f32 %v894_v11, 0.0  ;;  %v3605_v42 = vld [vmem:[%s4610_s5 + $0x30] sm:$0xff]  }
 0x158   : > { %v972_v13 = vpop.f32.mrf.mxu1  ;;  %v4207_v35 = vpop.f32.mrf.mxu0  ;;  %3246 = vmatpush3.bf16.msra.mxu0 %v3605_v42 }
 0x159   : > { %v1068_v39 = vmax.f32 %v969_v29, 0.0  ;;  %v1171_v53 = vpack.c.bf16 %v1067_v38, %v1059_v44  ;;  %v973_v60 = vadd.f32 %v972_v13, %v4176_v10  ;;  %v1130_v61 = vmax.f32 %v896_v49, 0.0  ;;  %v3606_v49 = vld [vmem:[%s4610_s5 + $0x68] sm:$0xff]  }
 0x15a   : > { %v974_v27 = vpop.f32.mrf.mxu1  ;;  %v901_v3 = vpop.f32.mrf.mxu0  ;;  %v1201_v38 = vpack.c.bf16 %v1129_v34, %v1121_v62  ;;  %3247 = vmatprep.subr.bf16.mxu0 %v3606_v49  ;;  %v3610_v34 = vld [vmem:[%s4610_s5 + $0x58] sm:$0xff]  }
 0x15b   : > { %v1172_v45 = vpack.c.bf16 %v1068_v39, %v1060_v37  ;;  %v975_v55 = vadd.f32 %v974_v27, %v4169_v2  ;;  %v1075_v12 = vmax.f32 %v973_v60, 0.0  ;;  %v1202_v16 = vpack.c.bf16 %v1130_v61, %v1122_v1 }
 0x15c   : > { %v976_v57 = vpop.f32.mrf.mxu1  ;;  %v903_v59 = vpop.f32.mrf.mxu0  ;;  %v902_v18 = vadd.f32 %v901_v3, %v4116_v56  ;;  %v900_v3 = vadd.f32 %v4207_v35, %v4132_v32 }
 0x15d   : > { %v977_v58 = vadd.f32 %v976_v57, %v4176_v10  ;;  %2384 = vmatprep.mubr.bf16.mxu1 %v1172_v45  ;;  %v1076_v31 = vmax.f32 %v975_v55, 0.0  ;;  %v904_v44 = vadd.f32 %v903_v59, %v4132_v32 }
 0x15e   : > { %v978_v50 = vpop.f32.mrf.mxu1  ;;  %2292 = vmatmul.mubr.bf16.gmra.mxu0 %v1185_v40  ;;  %v905_v5 = vpop.f32.mrf.mxu0  ;;  %v1138_v29 = vmax.f32 %v902_v18, 0.0  ;;  %v1137_v35 = vmax.f32 %v900_v3, 0.0 }
 0x15f   : > { %v979_v51 = vadd.f32 %v978_v50, %v4169_v2  ;;  %2385 = vmatmul.mubr.bf16.gmra.mxu1 %v1171_v53  ;;  %2301 = vmatprep.mubr.bf16.mxu0 %v1194_v20  ;;  %v1083_v41 = vmax.f32 %v977_v58, 0.0  ;;  %v906_v19 = vadd.f32 %v905_v5, %v4116_v56  ;;  %v3607_v53 = vld [vmem:[%s4610_s5 + $0x28] sm:$0xff]   ;;  %v1145_v55 = vmax.f32 %v904_v44, 0.0  ;;  %v3609_v5 = vld [vmem:[%s4610_s5 + $0x20] sm:$0xff]  }
 0x160   : > { %v982_v63 = vpop.f32.mrf.mxu1  ;;  %3248 = vmatpush3.bf16.msra.mxu0 %v3607_v53 }
 0x161   : > { %v1084_v4 = vmax.f32 %v979_v51, 0.0  ;;  %v1179_v21 = vpack.c.bf16 %v1083_v41, %v1075_v12  ;;  %v983_v26 = vadd.f32 %v982_v63, %v4176_v10  ;;  %v1146_v13 = vmax.f32 %v906_v19, 0.0 }
 0x162   : > { %v984_v7 = vpop.f32.mrf.mxu1  ;;  %v1209_v43 = vpack.c.bf16 %v1145_v55, %v1137_v35 }
 0x163   : > { %v1180_v14 = vpack.c.bf16 %v1084_v4, %v1076_v31  ;;  %v985_v47 = vadd.f32 %v984_v7, %v4169_v2  ;;  %v1091_v40 = vmax.f32 %v983_v26, 0.0  ;;  %v1210_v8 = vpack.c.bf16 %v1146_v13, %v1138_v29  ;;  %v3608_v4 = vld [vmem:[%s4610_s5 + $0x60] sm:$0xff]  }
 0x164   : > { %v986_v54 = vpop.f32.mrf.mxu1  ;;  %3249 = vmatprep.subr.bf16.mxu0 %v3608_v4 }
 0x165   : > { %v987_v24 = vadd.f32 %v986_v54, %v4176_v10  ;;  %2394 = vmatprep.mubr.bf16.mxu1 %v1180_v14  ;;  %v1092_v30 = vmax.f32 %v985_v47, 0.0  ;;  %3250 = vmatpush3.bf16.msra.mxu0 %v3609_v5 }
 0x166   : > { %v988_v25 = vpop.f32.mrf.mxu1  ;;  %2302 = vmatmul.mubr.bf16.gmra.mxu0 %v1193_v9  ;;  %3251 = vmatprep.subr.bf16.mxu0 %v3610_v34 }
 0x167   : > { %v989_v56 = vadd.f32 %v988_v25, %v4169_v2  ;;  %2395 = vmatmul.mubr.bf16.gmra.mxu1 %v1179_v21  ;;  %2311 = vmatprep.mubr.bf16.mxu0 %v1202_v16  ;;  %v1099_v33 = vmax.f32 %v987_v24, 0.0  ;;  %v3611_v25 = vld [vmem:[%s4610_s5 + $0x18] sm:$0xff]  }
 0x168   : > { %v992_v28 = vpop.f32.mrf.mxu1 }
 0x169   : > { %v1100_v37 = vmax.f32 %v989_v56, 0.0  ;;  %v1187_v23 = vpack.c.bf16 %v1099_v33, %v1091_v40  ;;  %v993_v32 = vadd.f32 %v992_v28, %v4176_v10  ;;  %3252 = vmatpush3.bf16.msra.mxu0 %v3611_v25  ;;  %v3612_v33 = vld [vmem:[%s4610_s5 + $0x50] sm:$0xff]  }
 0x16a   : > { %v994_v39 = vpop.f32.mrf.mxu1  ;;  %3253 = vmatprep.subr.bf16.mxu0 %v3612_v33 }
 0x16b   : > { %v1188_v27 = vpack.c.bf16 %v1100_v37, %v1092_v30  ;;  %v995_v57 = vadd.f32 %v994_v39, %v4169_v2  ;;  %v1107_v60 = vmax.f32 %v993_v32, 0.0  ;;  %v3615_v37 = vld [vmem:[%s4610_s5 + $0x8] sm:$0xff]   ;;  %v3617_v39 = vld [vmem:[%s4610_s5] sm:$0xff]  }
 0x16c   : > { %v996_v45 = vpop.f32.mrf.mxu1 }
 0x16d   : > { %v997_v20 = vadd.f32 %v996_v45, %v4176_v10  ;;  %2404 = vmatprep.mubr.bf16.mxu1 %v1188_v27  ;;  %v1108_v50 = vmax.f32 %v995_v57, 0.0  ;;  %v1341_v45 = vld [vmem:[%s4609_s4] sm:$0x3] }
 0x16e   : > { %v998_v15 = vpop.f32.mrf.mxu1  ;;  %2312 = vmatmul.mubr.bf16.gmra.mxu0 %v1201_v38  ;;  %v3616_v38 = vld [vmem:[%s4610_s5 + $0x40] sm:$0xff]   ;;  %v4299_v57 = vrot.slane %v1341_v45, %v386_v0 }
 0x16f   : > { %v999_v58 = vadd.f32 %v998_v15, %v4169_v2  ;;  %2405 = vmatmul.mubr.bf16.gmra.mxu1 %v1187_v23  ;;  %2321 = vmatprep.mubr.bf16.mxu0 %v1210_v8  ;;  %v1115_v36 = vmax.f32 %v997_v20, 0.0  ;;  %v4305_v15 = vrot.slane %v1341_v45, %v390_v48 }
 0x170   : > { %v1002_v59 = vpop.f32.mrf.mxu1 }
 0x171   : > { %v1116_v52 = vmax.f32 %v999_v58, 0.0  ;;  %v1195_v1 = vpack.c.bf16 %v1115_v36, %v1107_v60  ;;  %v1003_v6 = vadd.f32 %v1002_v59, %v4176_v10  ;;  %v3619_v60 = vld [vmem:[%s4612_s7 + $0x10] sm:$0xff]  }
 0x172   : > { %v1004_v22 = vpop.f32.mrf.mxu1 }
 0x173   : > { %v1196_v51 = vpack.c.bf16 %v1116_v52, %v1108_v50  ;;  %v1005_v61 = vadd.f32 %v1004_v22, %v4169_v2  ;;  %v1123_v16 = vmax.f32 %v1003_v6, 0.0  ;;  %v3618_v22 = vld [vmem:[%s4612_s7 + $0x18] sm:$0xff]  }
 0x174   : > { %v1006_v63 = vpop.f32.mrf.mxu1  ;;  %3319 = vmatprep.subr.bf16.mxu1 %v3618_v22 }
 0x175   : > { %v1007_v31 = vadd.f32 %v1006_v63, %v4176_v10  ;;  %2414 = vmatprep.mubr.bf16.mxu1 %v1196_v51  ;;  %v1124_v12 = vmax.f32 %v1005_v61, 0.0  ;;  %3320 = vmatpush3.bf16.msra.mxu1 %v3618_v22 }
 0x176   : > { %v1008_v41 = vpop.f32.mrf.mxu1  ;;  %2322 = vmatmul.mubr.bf16.gmra.mxu0 %v1209_v43  ;;  %3321 = vmatprep.subr.bf16.mxu1 %v3619_v60 }
 0x177   : > { %v1009_v7 = vadd.f32 %v1008_v41, %v4169_v2  ;;  %2415 = vmatmul.mubr.bf16.gmra.mxu1 %v1195_v1  ;;  %v1131_v9 = vmax.f32 %v1007_v31, 0.0 }
 0x178   : > { %v1012_v11 = vpop.f32.mrf.mxu1 }
 0x179   : > { %v1132_v14 = vmax.f32 %v1009_v7, 0.0  ;;  %v1203_v21 = vpack.c.bf16 %v1131_v9, %v1123_v16  ;;  %v1013_v17 = vadd.f32 %v1012_v11, %v4176_v10  ;;  %3322 = vmatpush3.bf16.msra.mxu1 %v3619_v60 }
 0x17a   : > { %v1014_v54 = vpop.f32.mrf.mxu1 }
 0x17b   : > { %v1204_v18 = vpack.c.bf16 %v1132_v14, %v1124_v12  ;;  %v1015_v47 = vadd.f32 %v1014_v54, %v4169_v2  ;;  %v1139_v29 = vmax.f32 %v1013_v17, 0.0 }
 0x17c   : > { %v1016_v19 = vpop.f32.mrf.mxu1 }
 0x17d   : > { %v1017_v24 = vadd.f32 %v1016_v19, %v4176_v10  ;;  %2424 = vmatprep.mubr.bf16.mxu1 %v1204_v18  ;;  %v1140_v26 = vmax.f32 %v1015_v47, 0.0  ;;  %v3613_v10 = vld [vmem:[%s4610_s5 + $0x10] sm:$0xff]  }
 0x17e   : > { %v1018_v62 = vpop.f32.mrf.mxu1  ;;  %3254 = vmatpush3.bf16.msra.mxu0 %v3613_v10 }
 0x17f   : > { %v1019_v42 = vadd.f32 %v1018_v62, %v4169_v2  ;;  %2425 = vmatmul.mubr.bf16.gmra.mxu1 %v1203_v21  ;;  %v1147_v56 = vmax.f32 %v1017_v24, 0.0  ;;  %v3614_v2 = vld [vmem:[%s4610_s5 + $0x48] sm:$0xff]  }
 0x180   : > { %3255 = vmatprep.subr.bf16.mxu0 %v3614_v2 }
 0x181   : > { %v1148_v28 = vmax.f32 %v1019_v42, 0.0  ;;  %v1211_v30 = vpack.c.bf16 %v1147_v56, %v1139_v29 }
 0x182   : > { %3256 = vmatpush3.bf16.msra.mxu0 %v3615_v37 }
 0x183   : > { %v1212_v13 = vpack.c.bf16 %v1148_v28, %v1140_v26  ;;  %3257 = vmatprep.subr.bf16.mxu0 %v3616_v38 }
 0x185   : > { %2434 = vmatprep.mubr.bf16.mxu1 %v1212_v13 }
 0x186   : > { %3258 = vmatpush3.bf16.msra.mxu0 %v3617_v39 }
 0x187   : > { %2435 = vmatmul.mubr.bf16.gmra.mxu1 %v1211_v30 }
 0x1be   : > { %v2027_v40 = vpop.f32.mrf.mxu0 }
 0x1bf   : > { %v2028_v53 = vadd.f32 %v2027_v40, %v4299_v57 }
 0x1c0   : > { %v2029_v27 = vpop.f32.mrf.mxu0 }
 0x1c1   : > { %v2030_v55 = vadd.f32 %v2029_v27, %v4305_v15 }
 0x1c2   : > { %v4290_v3 = vpop.f32.mrf.mxu0 }
 0x1c4   : > { %v4292_v44 = vpop.f32.mrf.mxu0 }
 0x1c6   : > { %v2037_v8 = vpop.f32.mrf.mxu0 }
 0x1c7   : > { %v2038_v43 = vadd.f32 %v2037_v8, %v4299_v57 }
 0x1c8   : > { %v2039_v23 = vpop.f32.mrf.mxu0 }
 0x1c9   : > { %v2040_v1 = vadd.f32 %v2039_v23, %v4305_v15 }
 0x1ca   : > { %v4301_v20 = vpop.f32.mrf.mxu0 }
 0x1cc   : > { %v4307_v49 = vpop.f32.mrf.mxu0 }
 0x1ce   : > { %v2047_v35 = vpop.f32.mrf.mxu0  ;;  %v2140_v32 = vpop.f32.mrf.mxu1 }
 0x1cf   : > { %v4311_v58 = vadd.f32 %v2140_v32, %v2028_v53  ;;  %v2048_v12 = vadd.f32 %v2047_v35, %v4299_v57 }
 0x1d0   : > { %v2049_v59 = vpop.f32.mrf.mxu0  ;;  %v2142_v50 = vpop.f32.mrf.mxu1 }
 0x1d1   : > { %v4313_v0 = vadd.f32 %v2142_v50, %v2030_v55  ;;  %v2050_v54 = vadd.f32 %v2049_v59, %v4305_v15 }
 0x1d2   : > { %v4315_v36 = vpop.f32.mrf.mxu0  ;;  %v4317_v52 = vpop.f32.mrf.mxu1 }
 0x1d4   : > { %v4319_v46 = vpop.f32.mrf.mxu0  ;;  %v4321_v48 = vpop.f32.mrf.mxu1 }
 0x1d6   : > { %v2057_v51 = vpop.f32.mrf.mxu0  ;;  %v2150_v63 = vpop.f32.mrf.mxu1 }
 0x1d7   : > { %v4331_v61 = vadd.f32 %v2150_v63, %v2038_v43  ;;  %v2058_v25 = vadd.f32 %v2057_v51, %v4299_v57 }
 0x1d8   : > { %v2059_v31 = vpop.f32.mrf.mxu0  ;;  %v2152_v41 = vpop.f32.mrf.mxu1 }
 0x1d9   : > { %v4333_v4 = vadd.f32 %v2152_v41, %v2040_v1  ;;  %v2060_v26 = vadd.f32 %v2059_v31, %v4305_v15 }
 0x1da   : > { %v4335_v5 = vpop.f32.mrf.mxu0  ;;  %v4337_v6 = vpop.f32.mrf.mxu1 }
 0x1dc   : > { %v4339_v7 = vpop.f32.mrf.mxu0  ;;  %v4341_v11 = vpop.f32.mrf.mxu1 }
 0x1de   : > { %v2067_v9 = vpop.f32.mrf.mxu0  ;;  %v2160_v14 = vpop.f32.mrf.mxu1 }
 0x1df   : > { %v4345_v16 = vadd.f32 %v2160_v14, %v2048_v12  ;;  %v2068_v37 = vadd.f32 %v2067_v9, %v4299_v57 }
 0x1e0   : > { %v2069_v18 = vpop.f32.mrf.mxu0  ;;  %v2162_v19 = vpop.f32.mrf.mxu1 }
 0x1e1   : > { %v4347_v21 = vadd.f32 %v2162_v19, %v2050_v54  ;;  %v2070_v40 = vadd.f32 %v2069_v18, %v4305_v15 }
 0x1e2   : > { %v4349_v47 = vpop.f32.mrf.mxu0  ;;  %v4351_v24 = vpop.f32.mrf.mxu1 }
 0x1e4   : > { %v4353_v62 = vpop.f32.mrf.mxu0  ;;  %v4355_v34 = vpop.f32.mrf.mxu1 }
 0x1e6   : > { %v2077_v17 = vpop.f32.mrf.mxu0  ;;  %v2170_v42 = vpop.f32.mrf.mxu1 }
 0x1e7   : > { %v4359_v56 = vadd.f32 %v2170_v42, %v2058_v25  ;;  %v2078_v59 = vadd.f32 %v2077_v17, %v4299_v57 }
 0x1e8   : > { %v2079_v28 = vpop.f32.mrf.mxu0  ;;  %v2172_v29 = vpop.f32.mrf.mxu1 }
 0x1e9   : > { %v4361_v13 = vadd.f32 %v2172_v29, %v2060_v26  ;;  %v2080_v60 = vadd.f32 %v2079_v28, %v4305_v15 }
 0x1ea   : > { %v4363_v30 = vpop.f32.mrf.mxu0  ;;  %v4365_v33 = vpop.f32.mrf.mxu1 }
 0x1ec   : > { %v4367_v10 = vpop.f32.mrf.mxu0  ;;  %v4369_v2 = vpop.f32.mrf.mxu1 }
 0x1ee   : > { %v2087_v38 = vpop.f32.mrf.mxu0  ;;  %v2180_v39 = vpop.f32.mrf.mxu1 }
 0x1ef   : > { %v4373_v27 = vadd.f32 %v2180_v39, %v2068_v37  ;;  %v2088_v14 = vadd.f32 %v2087_v38, %v4299_v57 }
 0x1f0   : > { %v2089_v45 = vpop.f32.mrf.mxu0  ;;  %v2182_v8 = vpop.f32.mrf.mxu1 }
 0x1f1   : > { %v4375_v23 = vadd.f32 %v2182_v8, %v2070_v40  ;;  %v2090_v19 = vadd.f32 %v2089_v45, %v4305_v15 }
 0x1f2   : > { %v4377_v53 = vpop.f32.mrf.mxu0  ;;  %v4379_v35 = vpop.f32.mrf.mxu1 }
 0x1f3   : > { %4618 = vst [vmem:[#allocation8_spill] sm:$0xff] %v4377_v53 }
 0x1f4   : > { %v4381_v32 = vpop.f32.mrf.mxu0  ;;  %v4383_v55 = vpop.f32.mrf.mxu1 }
 0x1f5   : > { %4619 = vst [vmem:[#allocation9_spill] sm:$0xff] %v4381_v32 }
 0x1f6   : > { %v2097_v50 = vpop.f32.mrf.mxu0  ;;  %v2190_v22 = vpop.f32.mrf.mxu1 }
 0x1f7   : > { %v4387_v43 = vadd.f32 %v2190_v22, %v2078_v59  ;;  %v2098_v40 = vadd.f32 %v2097_v50, %v4299_v57 }
 0x1f8   : > { %v2099_v51 = vpop.f32.mrf.mxu0  ;;  %v2192_v63 = vpop.f32.mrf.mxu1 }
 0x1f9   : > { %4620 = vst [vmem:[#allocation10_spill] sm:$0xff] %v4387_v43  ;;  %v4389_v1 = vadd.f32 %v2192_v63, %v2080_v60  ;;  %v2100_v59 = vadd.f32 %v2099_v51, %v4305_v15  ;;  %v2034_v51 = vadd.f32 %v4292_v44, %v4305_v15  ;;  %v2042_v44 = vadd.f32 %v4301_v20, %v4299_v57 }
 0x1fa   : > { %v4391_v31 = vpop.f32.mrf.mxu0  ;;  %v4393_v41 = vpop.f32.mrf.mxu1 }
 0x1fb   : > { %4621 = vst [vmem:[#allocation11_spill] sm:$0xff] %v4391_v31 }
 0x1fc   : > { %v4395_v12 = vpop.f32.mrf.mxu0  ;;  %v4397_v9 = vpop.f32.mrf.mxu1 }
 0x1fd   : > { %4622 = vst [vmem:[#allocation12_spill] sm:$0xff] %v4395_v12  ;;  %v2032_v12 = vadd.f32 %v4290_v3, %v4299_v57 }
 0x1fe   : > { %v2200_v54 = vpop.f32.mrf.mxu1  ;;  %v2253_v18 = vpop.f32.mrf.mxu0 }
 0x1ff   : > { %v4401_v25 = vadd.f32 %v2200_v54, %v2088_v14 }
 0x200   : > { %v2202_v17 = vpop.f32.mrf.mxu1  ;;  %v2255_v42 = vpop.f32.mrf.mxu0 }
 0x201   : > { %4623 = vst [vmem:[#allocation13_spill] sm:$0xff] %v4401_v25  ;;  %v4403_v26 = vadd.f32 %v2202_v17, %v2090_v19 }
 0x202   : > { %v4405_v28 = vpop.f32.mrf.mxu1  ;;  %v2257_v29 = vpop.f32.mrf.mxu0 }
 0x203   : > { %4624 = vst [vmem:[#allocation14_spill] sm:$0xff] %v4403_v26  ;;  %4625 = vst [vmem:[#allocation15_spill] sm:$0xff] %v4405_v28 }
 0x204   : > { %v4407_v37 = vpop.f32.mrf.mxu1  ;;  %v2259_v39 = vpop.f32.mrf.mxu0 }
 0x205   : > { %4626 = vst [vmem:[#allocation16_spill] sm:$0xff] %v4407_v37 }
 0x206   : > { %v2210_v8 = vpop.f32.mrf.mxu1  ;;  %v2263_v38 = vpop.f32.mrf.mxu0 }
 0x207   : > { %v4411_v22 = vadd.f32 %v2210_v8, %v2098_v40  ;;  %v2145_v40 = vadd.f32 %v4317_v52, %v2032_v12 }
 0x208   : > { %v2212_v45 = vpop.f32.mrf.mxu1  ;;  %v2265_v60 = vpop.f32.mrf.mxu0 }
 0x209   : > { %4627 = vst [vmem:[#allocation17_spill] sm:$0xff] %v4411_v22  ;;  %v4413_v63 = vadd.f32 %v2212_v45, %v2100_v59  ;;  %v2147_v59 = vadd.f32 %v4321_v48, %v2034_v51  ;;  %v2256_v45 = vadd.f32 %v2255_v42, %v4313_v0  ;;  %v2044_v0 = vadd.f32 %v4307_v49, %v4305_v15 }
 0x20a   : > { %v4415_v14 = vpop.f32.mrf.mxu1  ;;  %v2267_v54 = vpop.f32.mrf.mxu0 }
 0x20b   : > { %4628 = vst [vmem:[#allocation18_spill] sm:$0xff] %v4413_v63  ;;  %4629 = vst [vmem:[#allocation19_spill] sm:$0xff] %v4415_v14  ;;  %v2258_v63 = vadd.f32 %v2257_v29, %v2145_v40  ;;  %v2260_v26 = vadd.f32 %v2259_v39, %v2147_v59  ;;  %v2157_v39 = vadd.f32 %v4341_v11, %v2044_v0 }
 0x20c   : > { %v4417_v19 = vpop.f32.mrf.mxu1  ;;  %v2269_v17 = vpop.f32.mrf.mxu0  ;;  %v2052_v11 = vadd.f32 %v4315_v36, %v4299_v57 }
 0x20d   : > { %4630 = vst [vmem:[#allocation20_spill] sm:$0xff] %v4417_v19  ;;  %v2254_v19 = vadd.f32 %v2253_v18, %v4311_v58  ;;  %v2155_v58 = vadd.f32 %v4337_v6, %v2042_v44  ;;  %v2270_v51 = vadd.f32 %v2269_v17, %v2157_v39 }
 0x20e   : > { %v2273_v50 = vpop.f32.mrf.mxu0 }
 0x20f   : > { %v2366_v31 = vpop.f32.mrf.mxu1  ;;  %v2268_v20 = vadd.f32 %v2267_v54, %v2155_v58 }
 0x210   : > { %v2275_v8 = vpop.f32.mrf.mxu0  ;;  %v2367_v28 = vadd.f32 %v2366_v31, %v2254_v19 }
 0x211   : > { %v2368_v22 = vpop.f32.mrf.mxu1  ;;  %v2276_v0 = vadd.f32 %v2275_v8, %v4347_v21 }
 0x212   : > { %v2277_v14 = vpop.f32.mrf.mxu0  ;;  %v2369_v3 = vadd.f32 %v2368_v22, %v2256_v45  ;;  %v2445_v29 = vmax.f32 %v2367_v28, 0.0  ;;  %v2266_v22 = vadd.f32 %v2265_v60, %v4333_v4 }
 0x213   : > { %v2370_v25 = vpop.f32.mrf.mxu1 }
 0x214   : > { %v2371_v37 = vadd.f32 %v2370_v25, %v2258_v63  ;;  %v2279_v32 = vpop.f32.mrf.mxu0  ;;  %v2446_v18 = vmax.f32 %v2369_v3, 0.0 }
 0x215   : > { %v2372_v53 = vpop.f32.mrf.mxu1 }
 0x216   : > { %v2373_v52 = vadd.f32 %v2372_v53, %v2260_v26  ;;  %v2447_v12 = vmax.f32 %v2371_v37, 0.0  ;;  %v4429_v43 = vpop.f32.mrf.mxu0  ;;  %v2264_v26 = vadd.f32 %v2263_v38, %v4331_v61  ;;  %v2054_v61 = vadd.f32 %v4319_v46, %v4305_v15 }
 0x217   : > { %v2376_v48 = vpop.f32.mrf.mxu1  ;;  %v2165_v38 = vadd.f32 %v4351_v24, %v2052_v11  ;;  %v2284_v11 = vadd.f32 %v4429_v43, %v4359_v56  ;;  %v2074_v56 = vadd.f32 %v4353_v62, %v4305_v15 }
 0x218   : > { %v2448_v42 = vmax.f32 %v2373_v52, 0.0  ;;  %v2285_v25 = vpop.f32.mrf.mxu0  ;;  %v2477_v37 = vpack.c.bf16 %v2447_v12, %v2445_v29  ;;  %v2377_v6 = vadd.f32 %v2376_v48, %v2264_v26  ;;  %v2167_v48 = vadd.f32 %v4355_v34, %v2054_v61 }
 0x219   : > { %v2378_v31 = vpop.f32.mrf.mxu1  ;;  %v2278_v36 = vadd.f32 %v2277_v14, %v2165_v38  ;;  %v2062_v34 = vadd.f32 %v4335_v5, %v4299_v57 }
 0x21a   : > { %v2478_v53 = vpack.c.bf16 %v2448_v42, %v2446_v18  ;;  %v2287_v63 = vpop.f32.mrf.mxu0  ;;  %v2379_v49 = vadd.f32 %v2378_v31, %v2266_v22  ;;  %v2449_v44 = vmax.f32 %v2377_v6, 0.0  ;;  %v2274_v18 = vadd.f32 %v2273_v50, %v4345_v16 }
 0x21b   : > { %v2380_v19 = vpop.f32.mrf.mxu1  ;;  %v2280_v39 = vadd.f32 %v2279_v32, %v2167_v48  ;;  %v2064_v16 = vadd.f32 %v4339_v7, %v4305_v15  ;;  %v2175_v32 = vadd.f32 %v4365_v33, %v2062_v34  ;;  %v2286_v6 = vadd.f32 %v2285_v25, %v4361_v13 }
 0x21c   : > { %v2381_v40 = vadd.f32 %v2380_v19, %v2268_v20  ;;  %2660 = vmatprep.mubr.bf16.mxu0 %v2478_v53  ;;  %v2289_v59 = vpop.f32.mrf.mxu0  ;;  %v2450_v17 = vmax.f32 %v2379_v49, 0.0 }
 0x21d   : > { %v2382_v28 = vpop.f32.mrf.mxu1  ;;  %2661 = vmatmul.mubr.bf16.vlgmr.msra.gmra.mxu0 %v2477_v37  ;;  %v2288_v5 = vadd.f32 %v2287_v63, %v2175_v32 }
 0x21e   : > { %v2383_v45 = vadd.f32 %v2382_v28, %v2270_v51  ;;  %v2451_v4 = vmax.f32 %v2381_v40, 0.0  ;;  %v4439_v60 = vpop.f32.mrf.mxu0  ;;  %v2177_v40 = vadd.f32 %v4369_v2, %v2064_v16  ;;  %v2072_v2 = vadd.f32 %v4349_v47, %v4299_v57 }
 0x21f   : > { %v2386_v54 = vpop.f32.mrf.mxu1 }
 0x220   : > { %v2452_v3 = vmax.f32 %v2383_v45, 0.0  ;;  %v2295_v52 = vpop.f32.mrf.mxu0  ;;  %v2479_v42 = vpack.c.bf16 %v2451_v4, %v2449_v44  ;;  %v2387_v24 = vadd.f32 %v2386_v54, %v2274_v18  ;;  %v2290_v7 = vadd.f32 %v2289_v59, %v2177_v40 }
 0x221   : > { %v2388_v12 = vpop.f32.mrf.mxu1  ;;  %v2185_v43 = vadd.f32 %v4379_v35, %v2072_v2  ;;  %v2296_v18 = vadd.f32 %v2295_v52, %v4375_v23 }
 0x222   : > { %v2480_v58 = vpack.c.bf16 %v2452_v3, %v2450_v17  ;;  %v2297_v29 = vpop.f32.mrf.mxu0  ;;  %v2389_v46 = vadd.f32 %v2388_v12, %v2276_v0  ;;  %v2453_v19 = vmax.f32 %v2387_v24, 0.0 }
 0x223   : > { %v2390_v31 = vpop.f32.mrf.mxu1  ;;  %v2298_v47 = vadd.f32 %v2297_v29, %v2185_v43  ;;  %v2084_v29 = vadd.f32 %v4367_v10, %v4305_v15 }
 0x224   : > { %v2391_v22 = vadd.f32 %v2390_v31, %v2278_v36  ;;  %2668 = vmatprep.mubr.bf16.mxu0 %v2480_v58  ;;  %v2299_v20 = vpop.f32.mrf.mxu0  ;;  %v2454_v50 = vmax.f32 %v2389_v46, 0.0  ;;  %v2187_v58 = vadd.f32 %v4383_v55, %v2074_v56  ;;  %v2294_v31 = vadd.f32 %v4439_v60, %v4373_v27  ;;  %v4636_v56 = vld [vmem:[#allocation14_spill] sm:$0xff] }
 0x225   : > { %v2392_v53 = vpop.f32.mrf.mxu1  ;;  %2669 = vmatmul.mubr.bf16.gmra.mxu0 %v2479_v42  ;;  %v2082_v55 = vadd.f32 %v4363_v30, %v4299_v57  ;;  %v2197_v32 = vadd.f32 %v4397_v9, %v2084_v29  ;;  %v4631_v30 = vld [vmem:[#allocation10_spill] sm:$0xff] }
 0x226   : > { %v2393_v26 = vadd.f32 %v2392_v53, %v2280_v39  ;;  %v2455_v21 = vmax.f32 %v2391_v22, 0.0  ;;  %v4449_v14 = vpop.f32.mrf.mxu0  ;;  %v2300_v22 = vadd.f32 %v2299_v20, %v2187_v58 }
 0x227   : > { %v2396_v8 = vpop.f32.mrf.mxu1  ;;  %v2195_v27 = vadd.f32 %v4393_v41, %v2082_v55 }
 0x228   : > { %v2456_v37 = vmax.f32 %v2393_v26, 0.0  ;;  %v2305_v51 = vpop.f32.mrf.mxu0  ;;  %v2481_v45 = vpack.c.bf16 %v2455_v21, %v2453_v19  ;;  %v2397_v38 = vadd.f32 %v2396_v8, %v2284_v11 }
 0x229   : > { %v2398_v49 = vpop.f32.mrf.mxu1 }
 0x22a   : > { %v2482_v28 = vpack.c.bf16 %v2456_v37, %v2454_v50  ;;  %v2307_v4 = vpop.f32.mrf.mxu0  ;;  %v2399_v61 = vadd.f32 %v2398_v49, %v2286_v6  ;;  %v2457_v48 = vmax.f32 %v2397_v38, 0.0  ;;  %v2306_v50 = vadd.f32 %v2305_v51, %v4389_v1 }
 0x22b   : > { %v2400_v54 = vpop.f32.mrf.mxu1  ;;  %v2308_v37 = vadd.f32 %v2307_v4, %v2195_v27  ;;  %v2304_v49 = vadd.f32 %v4449_v14, %v4631_v30  ;;  %v4633_v4 = vld [vmem:[#allocation9_spill] sm:$0xff]  ;;  %v4634_v14 = vld [vmem:[#allocation15_spill] sm:$0xff] }
 0x22c   : > { %v2401_v33 = vadd.f32 %v2400_v54, %v2288_v5  ;;  %2676 = vmatprep.mubr.bf16.mxu0 %v2482_v28  ;;  %v2309_v17 = vpop.f32.mrf.mxu0  ;;  %v2458_v59 = vmax.f32 %v2399_v61, 0.0  ;;  %v4632_v54 = vld [vmem:[#allocation8_spill] sm:$0xff]  ;;  %v2094_v61 = vadd.f32 %v4633_v4, %v4305_v15 }
 0x22d   : > { %v2402_v3 = vpop.f32.mrf.mxu1  ;;  %2677 = vmatmul.mubr.bf16.gmra.mxu0 %v2481_v45  ;;  %v2310_v5 = vadd.f32 %v2309_v17, %v2197_v32  ;;  %v2092_v9 = vadd.f32 %v4632_v54, %v4299_v57 }
 0x22e   : > { %v2403_v13 = vadd.f32 %v2402_v3, %v2290_v7  ;;  %v2459_v25 = vmax.f32 %v2401_v33, 0.0  ;;  %v4460_v63 = vpop.f32.mrf.mxu0 }
 0x22f   : > { %v2406_v44 = vpop.f32.mrf.mxu1  ;;  %v2205_v33 = vadd.f32 %v4634_v14, %v2092_v9  ;;  %v4504_v14 = vld [vmem:[%s4611_s6] ss:$0 sm:$0xff] }
 0x230   : > { %v2460_v12 = vmax.f32 %v2403_v13, 0.0  ;;  %v2315_v0 = vpop.f32.mrf.mxu0  ;;  %v2483_v39 = vpack.c.bf16 %v2459_v25, %v2457_v48  ;;  %v2407_v35 = vadd.f32 %v2406_v44, %v2294_v31  ;;  %v4635_v25 = vld [vmem:[#allocation16_spill] sm:$0xff]  ;;  %v4637_v48 = vld [vmem:[#allocation13_spill] sm:$0xff] }
 0x231   : > { %v2408_v36 = vpop.f32.mrf.mxu1  ;;  %v2207_v44 = vadd.f32 %v4635_v25, %v2094_v61  ;;  %v2316_v43 = vadd.f32 %v2315_v0, %v4636_v56 }
 0x232   : > { %v2484_v42 = vpack.c.bf16 %v2460_v12, %v2458_v59  ;;  %v2409_v62 = vadd.f32 %v2408_v36, %v2296_v18  ;;  %v2317_v53 = vpop.f32.mrf.mxu0  ;;  %v2461_v21 = vmax.f32 %v2407_v35, 0.0  ;;  %v2314_v36 = vadd.f32 %v4460_v63, %v4637_v48  ;;  %v4640_v63 = vld [vmem:[#allocation19_spill] sm:$0xff] }
 0x233   : > { %v2410_v46 = vpop.f32.mrf.mxu1  ;;  %v2318_v59 = vadd.f32 %v2317_v53, %v2205_v33 }
 0x234   : > { %v2411_v24 = vadd.f32 %v2410_v46, %v2298_v47  ;;  %2684 = vmatprep.mubr.bf16.mxu0 %v2484_v42  ;;  %v2462_v60 = vmax.f32 %v2409_v62, 0.0  ;;  %v2319_v8 = vpop.f32.mrf.mxu0  ;;  %v4638_v62 = vld [vmem:[#allocation11_spill] sm:$0xff] }
 0x235   : > { %v2412_v34 = vpop.f32.mrf.mxu1  ;;  %2685 = vmatmul.mubr.bf16.gmra.mxu0 %v2483_v39  ;;  %v2320_v47 = vadd.f32 %v2319_v8, %v2207_v44  ;;  %v4642_v8 = vld [vmem:[#allocation18_spill] sm:$0xff] }
 0x236   : > { %v2413_v26 = vadd.f32 %v2412_v34, %v2300_v22  ;;  %v2463_v23 = vmax.f32 %v2411_v24, 0.0  ;;  %v2323_v41 = vpop.f32.mrf.mxu0  ;;  %v2102_v24 = vadd.f32 %v4638_v62, %v4299_v57  ;;  %v4639_v34 = vld [vmem:[#allocation12_spill] sm:$0xff]  ;;  %v4643_v57 = vld [vmem:[#allocation17_spill] sm:$0xff] }
 0x237   : > { %v2416_v52 = vpop.f32.mrf.mxu1  ;;  %v2104_v55 = vadd.f32 %v4639_v34, %v4305_v15 }
 0x238   : > { %v2464_v20 = vmax.f32 %v2413_v26, 0.0  ;;  %v2485_v40 = vpack.c.bf16 %v2463_v23, %v2461_v21  ;;  %v2417_v11 = vadd.f32 %v2416_v52, %v2304_v49  ;;  %v2325_v2 = vpop.f32.mrf.mxu0  ;;  %v2215_v26 = vadd.f32 %v4640_v63, %v2102_v24 }
 0x239   : > { %v2418_v16 = vpop.f32.mrf.mxu1 }
 0x23a   : > { %v2486_v19 = vpack.c.bf16 %v2464_v20, %v2462_v60  ;;  %v2419_v10 = vadd.f32 %v2418_v16, %v2306_v50  ;;  %v2465_v3 = vmax.f32 %v2417_v11, 0.0  ;;  %v2327_v39 = vpop.f32.mrf.mxu0  ;;  %v4641_v20 = vld [vmem:[#allocation20_spill] sm:$0xff]  ;;  %v2326_v16 = vadd.f32 %v2325_v2, %v4642_v8 }
 0x23b   : > { %v2420_v6 = vpop.f32.mrf.mxu1  ;;  %v2217_v21 = vadd.f32 %v4641_v20, %v2104_v55  ;;  %v2328_v32 = vadd.f32 %v2327_v39, %v2215_v26 }
 0x23c   : > { %v2421_v28 = vadd.f32 %v2420_v6, %v2308_v37  ;;  %2692 = vmatprep.mubr.bf16.mxu0 %v2486_v19  ;;  %v2466_v38 = vmax.f32 %v2419_v10, 0.0  ;;  %v2329_v29 = vpop.f32.mrf.mxu0  ;;  %v2324_v37 = vadd.f32 %v2323_v41, %v4643_v57  ;;  %v3620_v41 = vld [vmem:[%s4612_s7 + $0x8] sm:$0xff]  }
 0x23d   : > { %v2422_v45 = vpop.f32.mrf.mxu1  ;;  %2693 = vmatmul.mubr.bf16.gmra.mxu0 %v2485_v40  ;;  %v2330_v49 = vadd.f32 %v2329_v29, %v2217_v21  ;;  %3323 = vmatprep.subr.bf16.mxu1 %v3620_v41 }
 0x23e   : > { %v2423_v7 = vadd.f32 %v2422_v45, %v2310_v5  ;;  %v2467_v1 = vmax.f32 %v2421_v28, 0.0  ;;  %3324 = vmatpush3.bf16.msra.mxu1 %v3620_v41 }
 0x23f   : > { %v2426_v51 = vpop.f32.mrf.mxu1 }
 0x240   : > { %v2468_v17 = vmax.f32 %v2423_v7, 0.0  ;;  %v2487_v58 = vpack.c.bf16 %v2467_v1, %v2465_v3  ;;  %v2427_v46 = vadd.f32 %v2426_v51, %v2314_v36  ;;  %v3621_v1 = vld [vmem:[%s4612_s7] sm:$0xff]  }
 0x241   : > { %v2428_v13 = vpop.f32.mrf.mxu1  ;;  %3325 = vmatprep.subr.bf16.mxu1 %v3621_v1 }
 0x242   : > { %v2488_v12 = vpack.c.bf16 %v2468_v17, %v2466_v38  ;;  %v2429_v42 = vadd.f32 %v2428_v13, %v2316_v43  ;;  %v2469_v27 = vmax.f32 %v2427_v46, 0.0  ;;  %3326 = vmatpush3.bf16.msra.mxu1 %v3621_v1 }
 0x243   : > { %v2430_v18 = vpop.f32.mrf.mxu1 }
 0x244   : > { %v2431_v31 = vadd.f32 %v2430_v18, %v2318_v59  ;;  %2700 = vmatprep.mubr.bf16.mxu0 %v2488_v12  ;;  %v2470_v23 = vmax.f32 %v2429_v42, 0.0 }
 0x245   : > { %v2432_v22 = vpop.f32.mrf.mxu1  ;;  %2701 = vmatmul.mubr.bf16.gmra.mxu0 %v2487_v58 }
 0x246   : > { %v2433_v35 = vadd.f32 %v2432_v22, %v2320_v47  ;;  %v2471_v0 = vmax.f32 %v2431_v31, 0.0 }
 0x247   : > { %v2436_v53 = vpop.f32.mrf.mxu1 }
 0x248   : > { %v2472_v52 = vmax.f32 %v2433_v35, 0.0  ;;  %v2489_v19 = vpack.c.bf16 %v2471_v0, %v2469_v27  ;;  %v2437_v6 = vadd.f32 %v2436_v53, %v2324_v37 }
 0x249   : > { %v2438_v60 = vpop.f32.mrf.mxu1 }
 0x24a   : > { %v2490_v50 = vpack.c.bf16 %v2472_v52, %v2470_v23  ;;  %v2439_v40 = vadd.f32 %v2438_v60, %v2326_v16  ;;  %v2473_v54 = vmax.f32 %v2437_v6, 0.0 }
 0x24b   : > { %v2440_v30 = vpop.f32.mrf.mxu1 }
 0x24c   : > { %v2441_v15 = vadd.f32 %v2440_v30, %v2328_v32  ;;  %2708 = vmatprep.mubr.bf16.mxu0 %v2490_v50  ;;  %v2474_v11 = vmax.f32 %v2439_v40, 0.0 }
 0x24d   : > { %v2442_v5 = vpop.f32.mrf.mxu1  ;;  %2709 = vmatmul.mubr.bf16.gmra.mxu0 %v2489_v19 }
 0x24e   : > { %v2443_v10 = vadd.f32 %v2442_v5, %v2330_v49  ;;  %v2475_v28 = vmax.f32 %v2441_v15, 0.0 }
 0x250   : > { %v2476_v45 = vmax.f32 %v2443_v10, 0.0  ;;  %v2491_v7 = vpack.c.bf16 %v2475_v28, %v2473_v54 }
 0x252   : > { %v2492_v9 = vpack.c.bf16 %v2476_v45, %v2474_v11 }
 0x254   : > { %2716 = vmatprep.mubr.bf16.mxu0 %v2492_v9 }
 0x255   : > { %2717 = vmatmul.mubr.bf16.gmra.mxu0 %v2491_v7 }
 0x2dd   : > { %v3259_v51 = vpop.f32.mrf.mxu0 }
 0x2df   : > { %v3260_v4 = vpop.f32.mrf.mxu0 }
 0x2e0   : > { %v3261_v61 = vadd.f32 %v3260_v4, %v3259_v51 }
 0x2e1   : > { %v3262_v33 = vpop.f32.mrf.mxu0 }
 0x2e2   : > { %v2663_v17 = vadd.f32 %v3261_v61, %v4504_v14 }
 0x2e3   : > { %v3263_v38 = vpop.f32.mrf.mxu0 }
 0x2e4   : > { %v3264_v3 = vadd.f32 %v3263_v38, %v3262_v33  ;;  %v2725_v44 = vmax.f32 %v2663_v17, 0.0 }
 0x2e5   : > { %v3265_v2 = vpop.f32.mrf.mxu0 }
 0x2e6   : > { %v2666_v13 = vadd.f32 %v3264_v3, %v4504_v14 }
 0x2e7   : > { %v3266_v25 = vpop.f32.mrf.mxu0 }
 0x2e8   : > { %v2726_v56 = vmax.f32 %v2666_v13, 0.0  ;;  %v3267_v43 = vadd.f32 %v3266_v25, %v3265_v2 }
 0x2e9   : > { %v3268_v59 = vpop.f32.mrf.mxu0 }
 0x2ea   : > { %v2741_v12 = vpack.c.bf16 %v2726_v56, %v2725_v44  ;;  %v2671_v36 = vadd.f32 %v3267_v43, %v4504_v14 }
 0x2eb   : > { %v3269_v48 = vpop.f32.mrf.mxu0 }
 0x2ec   : > { %v3270_v58 = vadd.f32 %v3269_v48, %v3268_v59  ;;  %3327 = vmatprep.mubr.msk.bf16.mxu1 %vm2788_vm1, %v2741_v12  ;;  %v2727_v31 = vmax.f32 %v2671_v36, 0.0 }
 0x2ed   : > { %v3271_v18 = vpop.f32.mrf.mxu0 }
 0x2ee   : > { %v2674_v47 = vadd.f32 %v3270_v58, %v4504_v14 }
 0x2ef   : > { %v3272_v42 = vpop.f32.mrf.mxu0 }
 0x2f0   : > { %v2728_v39 = vmax.f32 %v2674_v47, 0.0  ;;  %v3273_v46 = vadd.f32 %v3272_v42, %v3271_v18 }
 0x2f1   : > { %v3274_v22 = vpop.f32.mrf.mxu0 }
 0x2f2   : > { %v2742_v62 = vpack.c.bf16 %v2728_v39, %v2727_v31  ;;  %v2679_v35 = vadd.f32 %v3273_v46, %v4504_v14 }
 0x2f3   : > { %v3275_v24 = vpop.f32.mrf.mxu0 }
 0x2f4   : > { %v3276_v0 = vadd.f32 %v3275_v24, %v3274_v22  ;;  %3328 = vmatmul.mubr.msk.bf16.vlgmr.msra.gmra.mxu1 %vm2788_vm1, %v2742_v62  ;;  %v2729_v63 = vmax.f32 %v2679_v35, 0.0  ;;  %v3224_v62 = vld [vmem:[%s4613_s8] ss:$0 sm:$0xff] }
 0x2f5   : > { %v3277_v53 = vpop.f32.mrf.mxu0 }
 0x2f6   : > { %v2682_v34 = vadd.f32 %v3276_v0, %v4504_v14 }
 0x2f7   : > { %v3278_v55 = vpop.f32.mrf.mxu0 }
 0x2f8   : > { %v2730_v26 = vmax.f32 %v2682_v34, 0.0  ;;  %v3279_v23 = vadd.f32 %v3278_v55, %v3277_v53 }
 0x2f9   : > { %v3280_v52 = vpop.f32.mrf.mxu0 }
 0x2fa   : > { %v2743_v29 = vpack.c.bf16 %v2730_v26, %v2729_v63  ;;  %v2687_v60 = vadd.f32 %v3279_v23, %v4504_v14 }
 0x2fb   : > { %v3281_v27 = vpop.f32.mrf.mxu0 }
 0x2fc   : > { %v3282_v20 = vadd.f32 %v3281_v27, %v3280_v52  ;;  %3331 = vmatprep.mubr.msk.bf16.mxu1 %vm2788_vm1, %v2743_v29  ;;  %v2731_v32 = vmax.f32 %v2687_v60, 0.0 }
 0x2fd   : > { %v3283_v21 = vpop.f32.mrf.mxu0 }
 0x2fe   : > { %v2690_v8 = vadd.f32 %v3282_v20, %v4504_v14 }
 0x2ff   : > { %v3284_v16 = vpop.f32.mrf.mxu0 }
 0x300   : > { %v2732_v50 = vmax.f32 %v2690_v8, 0.0  ;;  %v3285_v57 = vadd.f32 %v3284_v16, %v3283_v21 }
 0x301   : > { %v3286_v37 = vpop.f32.mrf.mxu0 }
 0x302   : > { %v2744_v19 = vpack.c.bf16 %v2732_v50, %v2731_v32  ;;  %v2695_v49 = vadd.f32 %v3285_v57, %v4504_v14 }
 0x303   : > { %v3287_v30 = vpop.f32.mrf.mxu0 }
 0x304   : > { %v3288_v40 = vadd.f32 %v3287_v30, %v3286_v37  ;;  %3332 = vmatmul.mubr.msk.bf16.gmra.mxu1 %vm2788_vm1, %v2744_v19  ;;  %v2733_v10 = vmax.f32 %v2695_v49, 0.0 }
 0x305   : > { %v3289_v15 = vpop.f32.mrf.mxu0 }
 0x306   : > { %v2698_v6 = vadd.f32 %v3288_v40, %v4504_v14 }
 0x307   : > { %v3290_v5 = vpop.f32.mrf.mxu0 }
 0x308   : > { %v2734_v28 = vmax.f32 %v2698_v6, 0.0  ;;  %v3291_v11 = vadd.f32 %v3290_v5, %v3289_v15 }
 0x309   : > { %v3292_v45 = vpop.f32.mrf.mxu0 }
 0x30a   : > { %v2745_v54 = vpack.c.bf16 %v2734_v28, %v2733_v10  ;;  %v2703_v7 = vadd.f32 %v3291_v11, %v4504_v14 }
 0x30b   : > { %v3293_v9 = vpop.f32.mrf.mxu0 }
 0x30c   : > { %v3294_v41 = vadd.f32 %v3293_v9, %v3292_v45  ;;  %3335 = vmatprep.mubr.msk.bf16.mxu1 %vm2788_vm1, %v2745_v54  ;;  %v2735_v61 = vmax.f32 %v2703_v7, 0.0 }
 0x30d   : > { %v3295_v1 = vpop.f32.mrf.mxu0 }
 0x30e   : > { %v2706_v51 = vadd.f32 %v3294_v41, %v4504_v14 }
 0x30f   : > { %v3296_v4 = vpop.f32.mrf.mxu0 }
 0x310   : > { %v2736_v33 = vmax.f32 %v2706_v51, 0.0  ;;  %v3297_v38 = vadd.f32 %v3296_v4, %v3295_v1 }
 0x311   : > { %v3298_v17 = vpop.f32.mrf.mxu0 }
 0x312   : > { %v2746_v3 = vpack.c.bf16 %v2736_v33, %v2735_v61  ;;  %v2711_v13 = vadd.f32 %v3297_v38, %v4504_v14 }
 0x313   : > { %v3299_v2 = vpop.f32.mrf.mxu0 }
 0x314   : > { %v3300_v25 = vadd.f32 %v3299_v2, %v3298_v17  ;;  %3336 = vmatmul.mubr.msk.bf16.gmra.mxu1 %vm2788_vm1, %v2746_v3  ;;  %v2737_v59 = vmax.f32 %v2711_v13, 0.0 }
 0x315   : > { %v3301_v44 = vpop.f32.mrf.mxu0 }
 0x316   : > { %v2714_v56 = vadd.f32 %v3300_v25, %v4504_v14 }
 0x317   : > { %v3302_v43 = vpop.f32.mrf.mxu0 }
 0x318   : > { %v2738_v12 = vmax.f32 %v2714_v56, 0.0  ;;  %v3303_v48 = vadd.f32 %v3302_v43, %v3301_v44 }
 0x319   : > { %v3304_v36 = vpop.f32.mrf.mxu0 }
 0x31a   : > { %v2747_v58 = vpack.c.bf16 %v2738_v12, %v2737_v59  ;;  %v2719_v47 = vadd.f32 %v3303_v48, %v4504_v14 }
 0x31b   : > { %v3305_v18 = vpop.f32.mrf.mxu0 }
 0x31c   : > { %v3306_v42 = vadd.f32 %v3305_v18, %v3304_v36  ;;  %3339 = vmatprep.mubr.msk.bf16.mxu1 %vm2788_vm1, %v2747_v58  ;;  %v2739_v39 = vmax.f32 %v2719_v47, 0.0 }
 0x31e   : > { %v2722_v31 = vadd.f32 %v3306_v42, %v4504_v14 }
 0x320   : > { %v2740_v46 = vmax.f32 %v2722_v31, 0.0 }
 0x322   : > { %v2748_v22 = vpack.c.bf16 %v2740_v46, %v2739_v39 }
 0x324   : > { %3340 = vmatmul.mubr.msk.bf16.gmra.mxu1 %vm2788_vm1, %v2748_v22 }
 0x3b4   : > { %v3329_v24 = vpop.f32.mrf.mxu1 }
 0x3b5   : > { %v2856_v35 = vadd.f32 %v3329_v24, %v3224_v62 }
 0x3b6   : > { %v2847_v0 = vpop.f32.mrf.mxu1 }
 0x3b7   : > { %2912 = vst [vmem:[%s4536_s22 + $0x10] sm:$0xff] %v2856_v35  ;;  %v2848_v14 = vadd.f32 %v3224_v62, %v2847_v0 }
 0x3b8   : > { %v3330_v53 = vpop.f32.mrf.mxu1 }
 0x3b9   : > { %2910 = vst [vmem:[%s4536_s22] sm:$0xff] %v2848_v14  ;;  %v2859_v34 = vadd.f32 %v3330_v53, %v3224_v62 }
 0x3ba   : > { %v2850_v55 = vpop.f32.mrf.mxu1 }
 0x3bb   : > { %2913 = vst [vmem:[%s4536_s22 + $0x18] sm:$0xff] %v2859_v34  ;;  %v2851_v63 = vadd.f32 %v3224_v62, %v2850_v55 }
 0x3bd   : > { %2911 = vst [vmem:[%s4536_s22 + $0x8] sm:$0xff] %v2851_v63 }
 0x3c4   : > { %v3333_v26 = vpop.f32.mrf.mxu1 }
 0x3c5   : > { %v2872_v23 = vadd.f32 %v3333_v26, %v3224_v62 }
 0x3c6   : > { %v2863_v52 = vpop.f32.mrf.mxu1 }
 0x3c7   : > { %2916 = vst [vmem:[%s4536_s22 + $0x30] sm:$0xff] %v2872_v23  ;;  %v2864_v29 = vadd.f32 %v3224_v62, %v2863_v52 }
 0x3c8   : > { %v3334_v27 = vpop.f32.mrf.mxu1 }
 0x3c9   : > { %2914 = vst [vmem:[%s4536_s22 + $0x20] sm:$0xff] %v2864_v29  ;;  %v2875_v60 = vadd.f32 %v3334_v27, %v3224_v62 }
 0x3ca   : > { %v2866_v20 = vpop.f32.mrf.mxu1 }
 0x3cb   : > { %2917 = vst [vmem:[%s4536_s22 + $0x38] sm:$0xff] %v2875_v60  ;;  %v2867_v21 = vadd.f32 %v3224_v62, %v2866_v20 }
 0x3cd   : > { %2915 = vst [vmem:[%s4536_s22 + $0x28] sm:$0xff] %v2867_v21 }
 0x3d4   : > { %v3337_v8 = vpop.f32.mrf.mxu1 }
 0x3d5   : > { %v2888_v16 = vadd.f32 %v3337_v8, %v3224_v62 }
 0x3d6   : > { %v2879_v32 = vpop.f32.mrf.mxu1 }
 0x3d7   : > { %2920 = vst [vmem:[%s4536_s22 + $0x50] sm:$0xff] %v2888_v16  ;;  %v2880_v50 = vadd.f32 %v3224_v62, %v2879_v32 }
 0x3d8   : > { %v3338_v57 = vpop.f32.mrf.mxu1 }
 0x3d9   : > { %2918 = vst [vmem:[%s4536_s22 + $0x40] sm:$0xff] %v2880_v50  ;;  %v2891_v37 = vadd.f32 %v3338_v57, %v3224_v62 }
 0x3da   : > { %v2882_v19 = vpop.f32.mrf.mxu1 }
 0x3db   : > { %2921 = vst [vmem:[%s4536_s22 + $0x58] sm:$0xff] %v2891_v37  ;;  %v2883_v30 = vadd.f32 %v3224_v62, %v2882_v19 }
 0x3dd   : > { %2919 = vst [vmem:[%s4536_s22 + $0x48] sm:$0xff] %v2883_v30 }
 0x3e4   : > { %v3341_v49 = vpop.f32.mrf.mxu1 }
 0x3e5   : > { %v2904_v40 = vadd.f32 %v3341_v49, %v3224_v62 }
 0x3e6   : > { %v2895_v15 = vpop.f32.mrf.mxu1 }
 0x3e7   : > { %2924 = vst [vmem:[%s4536_s22 + $0x70] sm:$0xff] %v2904_v40  ;;  %v2896_v6 = vadd.f32 %v3224_v62, %v2895_v15 }
 0x3e8   : > { %v3342_v5 = vpop.f32.mrf.mxu1 }
 0x3e9   : > { %2922 = vst [vmem:[%s4536_s22 + $0x60] sm:$0xff] %v2896_v6  ;;  %v2907_v10 = vadd.f32 %v3342_v5, %v3224_v62 }
 0x3ea   : > { %v2898_v28 = vpop.f32.mrf.mxu1 }
 0x3eb   : > { %2925 = vst [vmem:[%s4536_s22 + $0x78] sm:$0xff] %v2907_v10  ;;  %v2899_v11 = vadd.f32 %v3224_v62, %v2898_v28 }
 0x3ed   : > { %2923 = vst [vmem:[%s4536_s22 + $0x68] sm:$0xff] %v2899_v11 }
 0x3ee   : > { %3661 = shalt.err (!%p3658_p0)
}
 0x3ef   : > { %s3662_s16 = scalar_lea.hbm %s4557_s26, 2048  ;;  %s3666_s14 = scalar_lea.hbm %s4614_s9, 4096 }
 0x3f0   : > { %p3663_p1 = scmp.ne.s32.totalorder %s4557_s26, %s3662_s16  ;;  %p3667_p4 = scmp.lt.s32.totalorder %s4557_s26, %s4614_s9 }
 0x3f1   : > { %p3668_p7 = scmp.lt.s32.totalorder %s3666_s14, %s3662_s16 }
 0x3f2   : > { %p3664_p2 = pnand %p3663_p1, %p3809_p5 }
 0x3f3   : > { %p3669_p6 = por %p3668_p7, %p3667_p4 }
 0x3f4   : > { %p3665_p3 = pneg %p3664_p2 }
 0x3f6   : > { %p3670_p8 = pnand %p3669_p6, %p3665_p3 }
 0x3f8   : > { %3673 = shalt.err (!%p3670_p8)
}
 0x3f9   : > { %s3719_s28 = smov 128   ;;  %s3720_s29 = smov 8  }
 0x3fa   : > { %3351 = dma.vmem_to_hbm [thread:$0]  (%p3809_p5), %s4559_s23, 2048, %s4557_s26, %s4565_s13, %s3719_s28, %s3719_s28, %s3720_s29  }
 0x3fb PF: > { %p3363_p9 = scmp.ge.s32.totalorder %s3712_s12, 2  ;;  %s2955_s17 = sand.u32 1, %s3700_s30  }
 0x3fc   : > { %p4644_p10 = scmp.ne.s32.totalorder %s4616_s20, 0  ;;  %s2956_s27 = scalar_lea.sflag [#allocation4], %s2955_s17 }
 0x3fe   : > { %p3358_p11 = pnand %p3363_p9, %p4644_p10 }
 0x400   : > { %p3359_p12 = pneg %p3358_p11 }
 0x402   : > { %3695 = dma.done.wait (%p3359_p12), %s2956_s27, 2048  }
 0x403   : > { %3697 = vsyncadd (%p3359_p12), %s2956_s27, 4294965248  ;;  %p20_p13 = scmp.ge.s32.totalorder %s3796_s15, 4   ;;  %s4645_s30 = smov %s3704_s10 }
 0x404   : > { %s4646_s10 = smov %s3708_s11  ;;  %s4647_s11 = smov %s3807_s18 }
 0x405   : > { %s4648_s12 = smov %s3796_s15  ;;  %22 = sbr.rel (!%p20_p13) target bundleno = 4 (0x4), region = 96 }
 0x40a   :  { %2961 = vsyncpa [#allocation3], 1 }
 0x40b   :  { %2963 = vsyncpa [#allocation3 + $0x1], 1 }
 0x40c   :  { %2964 = vsyncpa [#allocation4], 1 }
 0x40d   :  { %2966 = vsyncpa [#allocation4 + $0x1], 1 }

</bundles_post_ra>
